<compile_context>
chip_gen: v7x
topology: tpu7x:2x2x1
jax: 0.10.0
libtpu: 0.0.40
codegen_flags: <defaults>
</compile_context>

<pallas_src>
import functools
import numpy as np
import jax
import jax.numpy as jnp
from jax import lax
from jax.experimental import pallas as pl
from jax.experimental.pallas import tpu as pltpu

GN_EPS = 1e-5   # nn.GroupNorm default eps
BN_EPS = 1e-3   # ultralytics Conv BatchNorm2d eps (folded, eval mode)


def _erf_approx(x):
    # Abramowitz & Stegun 7.1.26 (max abs err ~1.5e-7).  The divide for t is moved to
    # the otherwise-idle EUP slot via approx reciprocal (~2^-12 rel err on t; the
    # end-to-end effect is well under the test tolerance).
    a1, a2, a3, a4, a5 = (0.254829592, -0.284496736, 1.421413741,
                          -1.453152027, 1.061405429)
    p = 0.3275911
    s = jnp.where(x >= 0.0, 1.0, -1.0)
    ax = jnp.abs(x)
    t = pl.reciprocal(1.0 + p * ax, approx=True)
    poly = ((((a5 * t + a4) * t + a3) * t + a2) * t + a1) * t
    return s * (1.0 - poly * jnp.exp(-ax * ax))


def _gelu_exact(x):
    return 0.5 * x * (1.0 + _erf_approx(x * 0.7071067811865476))


def poolformer_block_kernel(x_ref, invc_ref, masks_ref,
                            gn1w_ref, gn1b_ref, gn2w_ref, gn2b_ref,
                            w1_ref, b1_ref, w2_ref, b2_ref,
                            o_ref, *,
                            rolls, n_h, inv_cn, padded, matmul_dtype,
                            mlp_chunks, chunk):
    # One batch element per grid step.  x_ref: (C, Np) with Np = padded H*W on lanes.
    n_taps = len(rolls)
    x = x_ref[...].astype(jnp.float32)                       # (C, Np)

    # ---- norm1 (+ folded layer_scale_1): fused per-channel scale/shift ----
    # One-pass slab stats; pad lanes are zero so sums are exact with /(C*N_true).
    # (one-pass var is fine here; |mean| >> std would be the only risky regime)
    mu1 = jnp.sum(x) * inv_cn
    ex2 = jnp.sum(x * x) * inv_cn
    rs1 = lax.rsqrt(ex2 - mu1 * mu1 + GN_EPS)
    scale1 = gn1w_ref[...] * rs1                             # (C, 1)
    shift1 = gn1b_ref[...] - mu1 * scale1
    n1 = x * scale1 + shift1                                 # = ls1 * GroupNorm1(x)

    # ---- token mixer: separable 3x3 avg pool (count_include_pad=False) - identity ----
    # Horizontal pass (rolls of +-1) then vertical pass (rolls of +-W); validity
    # factorizes exactly, inv_cnt already holds 1/(row_cnt*col_cnt).  Circular wrap
    # (incl. wrap through pad lanes) is zeroed by the boundary masks.
    row = n1
    for k in range(n_h):
        row = row + pltpu.roll(n1, rolls[k], axis=1) * masks_ref[k:k + 1, :]
    acc = row
    for k in range(n_h, n_taps):
        acc = acc + pltpu.roll(row, rolls[k], axis=1) * masks_ref[k:k + 1, :]
    x1 = x + acc * invc_ref[...] - n1                        # x + ls1*(avg(norm1)-norm1)
    if padded:
        x1 = x1 * masks_ref[n_taps:n_taps + 1, :]            # zero pad lanes -> exact norm2 stats

    # ---- norm2: fused per-channel scale/shift ----
    mu2 = jnp.sum(x1) * inv_cn
    ey2 = jnp.sum(x1 * x1) * inv_cn
    rs2 = lax.rsqrt(ey2 - mu2 * mu2 + GN_EPS)
    scale2 = gn2w_ref[...] * rs2
    shift2 = gn2b_ref[...] - mu2 * scale2
    n2 = x1 * scale2 + shift2

    # ---- channel mixer MLP (BN scales folded into w1/w2, ls2 folded into w2/b2) ----
    w1 = w1_ref[...]
    b1 = b1_ref[...]
    w2 = w2_ref[...]
    b2 = b2_ref[...]
    for c in range(mlp_chunks):                              # static chunk loop (=1 at small N)
        sl = slice(c * chunk, (c + 1) * chunk)
        h = jnp.dot(w1, n2[:, sl].astype(matmul_dtype),
                    preferred_element_type=jnp.float32) + b1  # (hidden, chunk)
        h = _gelu_exact(h)
        o = jnp.dot(w2, h.astype(matmul_dtype),
                    preferred_element_type=jnp.float32) + b2  # (C, chunk)
        o_ref[:, sl] = (x1[:, sl] + o).astype(o_ref.dtype)


def build_pool_aux(H, W, n_pad, pool_size=3):
    """Separable pooling aux: per-position reciprocal valid-count (1, Np); boundary
    masks (horizontal taps, vertical taps, lane-valid) padded to a multiple of 8 rows;
    lane roll amounts (horizontal taps first)."""
    N = H * W
    pad = pool_size // 2
    ii, jj = np.meshgrid(np.arange(H), np.arange(W), indexing="ij")
    h_valid = [((jj + dj >= 0) & (jj + dj < W)) for dj in range(-pad, pad + 1) if dj != 0]
    v_valid = [((ii + di >= 0) & (ii + di < H)) for di in range(-pad, pad + 1) if di != 0]
    col_cnt = 1 + sum(v.astype(np.int64) for v in h_valid)
    row_cnt = 1 + sum(v.astype(np.int64) for v in v_valid)

    inv_cnt = np.zeros((1, n_pad), np.float32)
    inv_cnt[0, :N] = (1.0 / (col_cnt * row_cnt)).reshape(-1)

    # want shifted[p] = x[(p + s) % Np]; roll(x, a)[p] = x[(p - a) % Np] -> a = (-s) % Np
    rolls = tuple([(-dj) % n_pad for dj in range(-pad, pad + 1) if dj != 0] +
                  [(-di * W) % n_pad for di in range(-pad, pad + 1) if di != 0])
    n_taps = len(rolls)
    n_rows = ((n_taps + 1 + 7) // 8) * 8                     # sublane-aligned mask slab
    masks = np.zeros((n_rows, n_pad), np.float32)
    for k, v in enumerate(h_valid + v_valid):
        masks[k, :N] = v.reshape(-1).astype(np.float32)
    masks[n_taps, :N] = 1.0                                  # lane-valid mask (pad handling)
    return jnp.asarray(inv_cnt), jnp.asarray(masks), rolls, len(h_valid)


def _pick_mlp_chunks(n_pad, hidden, max_chunk_bytes=4 << 20):
    """Smallest chunk count (dividing n_pad into 128-aligned chunks) keeping the
    (hidden, chunk) intermediate under max_chunk_bytes (v7x VMEM headroom)."""
    m = n_pad // 128
    for d in range(1, m + 1):
        if m % d == 0 and hidden * (n_pad // d) * 4 <= max_chunk_bytes:
            return d
    return m


def _vmem_limit_bytes(C, hidden, n_pad, in_bytes, mm_bytes, chunk):
    slab = C * n_pad * 4
    est = (2 * 2 * C * n_pad * in_bytes      # double-buffered x-in + out blocks
           + 6 * slab                        # live f32 temporaries (x, n1, row, acc/x1, n2, out chunk)
           + 3 * hidden * chunk * 4          # h / gelu(h) chunk intermediates
           + 2 * 2 * hidden * C * mm_bytes   # w1 + w2 (double-buffered constants)
           + 16 * n_pad * 4)                 # masks, inv_cnt, per-channel columns
    est = int(1.5 * est) + (4 << 20)
    # >= default scoped limits on all generations, <= v7x's 64 MiB physical VMEM.
    return int(min(max(est, 32 << 20), 56 << 20))


def poolformer_block(x_nchw, params, pool_size=3,
                     matmul_dtype=jnp.float32, mlp_chunks=None):
    B, C, H, W = x_nchw.shape
    N = H * W
    n_pad = max(128, ((N + 127) // 128) * 128)               # lane-dense stores
    padded = n_pad != N
    hidden = params["w1"].shape[0]

    inv_cnt, masks, rolls, n_h = build_pool_aux(H, W, n_pad, pool_size)
    n_mask_rows = masks.shape[0]

    # NCHW -> (B, C, N): contiguous reshape (no HBM transpose); keep native dtype.
    x = x_nchw.reshape(B, C, N)
    if padded:
        x = jnp.pad(x, ((0, 0), (0, 0), (0, n_pad - N)))

    if mlp_chunks is None:
        mlp_chunks = _pick_mlp_chunks(n_pad, hidden)
    assert n_pad % mlp_chunks == 0
    chunk = n_pad // mlp_chunks

    f32 = jnp.float32
    col = lambda v: jnp.asarray(v, f32).reshape(-1, 1)
    ls1 = jnp.asarray(params["ls1"], f32)
    ls2 = jnp.asarray(params["ls2"], f32)
    # Fold static per-channel scales: ls1 -> norm1 affine; bn1_s -> w1 rows;
    # ls2*bn2_s -> w2 rows; ls2*bn2_b -> b2.
    gn1w = col(ls1 * jnp.asarray(params["gn1_w"], f32))
    gn1b = col(ls1 * jnp.asarray(params["gn1_b"], f32))
    gn2w = col(params["gn2_w"])
    gn2b = col(params["gn2_b"])
    w1 = (jnp.asarray(params["bn1_s"], f32)[:, None]
          * jnp.asarray(params["w1"], f32)).astype(matmul_dtype)
    b1 = col(params["bn1_b"])
    w2 = ((ls2 * jnp.asarray(params["bn2_s"], f32))[:, None]
          * jnp.asarray(params["w2"], f32)).astype(matmul_dtype)
    b2 = col(ls2 * jnp.asarray(params["bn2_b"], f32))

    ins = (x, inv_cnt, masks, gn1w, gn1b, gn2w, gn2b, w1, b1, w2, b2)

    def const(shape):
        zeros = (0,) * len(shape)
        return pl.BlockSpec(shape, lambda b, _z=zeros: _z)

    in_specs = [pl.BlockSpec((None, C, n_pad), lambda b: (b, 0, 0)),   # x: one element/step
                const((1, n_pad)), const((n_mask_rows, n_pad)),
                const((C, 1)), const((C, 1)), const((C, 1)), const((C, 1)),
                const((hidden, C)), const((hidden, 1)),
                const((C, hidden)), const((C, 1))]

    kernel = functools.partial(
        poolformer_block_kernel,
        rolls=rolls, n_h=n_h, inv_cn=1.0 / float(C * N),
        padded=padded, matmul_dtype=matmul_dtype,
        mlp_chunks=mlp_chunks, chunk=chunk)

    out = pl.pallas_call(
        kernel,
        out_shape=jax.ShapeDtypeStruct((B, C, n_pad), x.dtype),
        grid=(B,),
        in_specs=in_specs,
        out_specs=pl.BlockSpec((None, C, n_pad), lambda b: (b, 0, 0)),
        compiler_params=pltpu.CompilerParams(
            dimension_semantics=("parallel",),        # batch elements are independent
            vmem_limit_bytes=_vmem_limit_bytes(
                C, hidden, n_pad, x.dtype.itemsize,
                jnp.dtype(matmul_dtype).itemsize, chunk)),
    )(*ins)

    if padded:
        out = out[:, :, :N]
    return out.reshape(B, C, H, W)


def init_params(key, embed_dim, mlp_ratio=4, layer_scale_init=1e-5):
    hidden = int(mlp_ratio * embed_dim)
    ks = jax.random.split(key, 10)
    # Conv2d(1x1) weights in PyTorch (out_ch, in_ch) layout; trunc_normal_(std=0.02).
    w1 = 0.02 * jax.random.normal(ks[0], (hidden, embed_dim), jnp.float32)
    w2 = 0.02 * jax.random.normal(ks[1], (embed_dim, hidden), jnp.float32)
    bn_scale = 1.0 / np.sqrt(1.0 + BN_EPS)
    return {
        "gn1_w": 1.0 + 0.1 * jax.random.normal(ks[2], (embed_dim,), jnp.float32),
        "gn1_b": 0.1 * jax.random.normal(ks[3], (embed_dim,), jnp.float32),
        "gn2_w": 1.0 + 0.1 * jax.random.normal(ks[4], (embed_dim,), jnp.float32),
        "gn2_b": 0.1 * jax.random.normal(ks[5], (embed_dim,), jnp.float32),
        "ls1": layer_scale_init * jnp.ones((embed_dim,), jnp.float32),
        "ls2": layer_scale_init * jnp.ones((embed_dim,), jnp.float32),
        "w1": w1,                                   # (hidden, C)
        "w2": w2,                                   # (C, hidden)
        # Folded BatchNorm (eval): scale = gamma/sqrt(var+eps), bias = beta - mean*scale.
        "bn1_s": bn_scale * (1.0 + 0.05 * jax.random.normal(ks[6], (hidden,), jnp.float32)),
        "bn1_b": 0.05 * jax.random.normal(ks[7], (hidden,), jnp.float32),
        "bn2_s": bn_scale * (1.0 + 0.05 * jax.random.normal(ks[8], (embed_dim,), jnp.float32)),
        "bn2_b": 0.05 * jax.random.normal(ks[9], (embed_dim,), jnp.float32),
    }


def poolformer_block_ref(x, p):
    """Pure-JAX NCHW reference (independent of the roll/mask/separable pooling trick)."""
    def gn(v, w, b):
        mu = v.mean(axis=(1, 2, 3), keepdims=True)
        var = ((v - mu) ** 2).mean(axis=(1, 2, 3), keepdims=True)
        return (v - mu) / jnp.sqrt(var + GN_EPS) * w[None, :, None, None] + b[None, :, None, None]

    win, strd = (1, 1, 3, 3), (1, 1, 1, 1)
    pad = ((0, 0), (0, 0), (1, 1), (1, 1))
    n1 = gn(x, p["gn1_w"], p["gn1_b"])
    s = lax.reduce_window(n1, 0.0, lax.add, win, strd, pad)
    cnt = lax.reduce_window(jnp.ones_like(n1), 0.0, lax.add, win, strd, pad)
    tm = s / cnt - n1
    x1 = x + p["ls1"][None, :, None, None] * tm

    n2 = gn(x1, p["gn2_w"], p["gn2_b"])
    h = jnp.einsum('oi,bihw->bohw', p["w1"], n2, precision=lax.Precision.HIGHEST)
    h = h * p["bn1_s"][None, :, None, None] + p["bn1_b"][None, :, None, None]
    h = 0.5 * h * (1.0 + jax.scipy.special.erf(h / jnp.sqrt(2.0)))
    o = jnp.einsum('oi,bihw->bohw', p["w2"], h, precision=lax.Precision.HIGHEST)
    o = o * p["bn2_s"][None, :, None, None] + p["bn2_b"][None, :, None, None]
    return x1 + p["ls2"][None, :, None, None] * o


if __name__ == "__main__":
    key = jax.random.PRNGKey(0)
    kx, kp = jax.random.split(key)
    B, C, H, W = 2, 16, 16, 16           # embed_dim=16, mlp_ratio=4 -> hidden=64, N=256
    x = jax.random.normal(kx, (B, C, H, W), jnp.float32)
    # layer_scale_init=1.0 so both residual branches contribute at O(1) and the check
    # actually exercises the separable pooling, the folded norms, and the MLP.
    params = init_params(kp, C, layer_scale_init=1.0)
    y_ref = poolformer_block_ref(x, params)

    # 1) f32 MXU operands, lane-aligned N (16*16=256).
    y = jax.block_until_ready(poolformer_block(x, params))
    assert y.shape == x.shape
    err = float(jnp.max(jnp.abs(y - y_ref)))
    if err > 5e-4:
        raise AssertionError(f"f32/aligned mismatch vs reference: max abs err = {err}")

    # 2) non-128-aligned N (14*14=196 -> padded to 256) + forced 2-chunk MLP path.
    x2 = jax.random.normal(jax.random.PRNGKey(1), (B, C, 14, 14), jnp.float32)
    y2 = jax.block_until_ready(poolformer_block(x2, params, mlp_chunks=2))
    err2 = float(jnp.max(jnp.abs(y2 - poolformer_block_ref(x2, params))))
    if err2 > 5e-4:
        raise AssertionError(f"padded/chunked mismatch vs reference: max abs err = {err2}")

    # 3) bf16 MXU operands (v6e/v7x fast path) — looser tolerance, numerics change.
    y3 = jax.block_until_ready(poolformer_block(x, params, matmul_dtype=jnp.bfloat16))
    err3 = float(jnp.max(jnp.abs(y3 - y_ref)))
    if err3 > 2e-2:
        raise AssertionError(f"bf16-matmul mismatch vs reference: max abs err = {err3}")

    print("KERNEL_OK")
</pallas_src>

<mosaic_0001>
module attributes {stable_mosaic.version = 11 : i64} {
  func.func @poolformer_block_kernel(%arg0: i32, %arg1: memref<1x16x256xf32, #tpu.memory_space<vmem>>, %arg2: memref<1x256xf32, #tpu.memory_space<vmem>>, %arg3: memref<8x256xf32, #tpu.memory_space<vmem>>, %arg4: memref<16x1xf32, #tpu.memory_space<vmem>>, %arg5: memref<16x1xf32, #tpu.memory_space<vmem>>, %arg6: memref<16x1xf32, #tpu.memory_space<vmem>>, %arg7: memref<16x1xf32, #tpu.memory_space<vmem>>, %arg8: memref<64x16xf32, #tpu.memory_space<vmem>>, %arg9: memref<64x1xf32, #tpu.memory_space<vmem>>, %arg10: memref<16x64xf32, #tpu.memory_space<vmem>>, %arg11: memref<16x1xf32, #tpu.memory_space<vmem>>, %arg12: memref<1x16x256xf32, #tpu.memory_space<vmem>>) attributes {dimension_semantics = [#tpu.dimension_semantics<parallel>], iteration_bounds = array<i64: 2>, scalar_prefetch = 0 : i64, scratch_operands = 0 : i64, tpu.core_type = #tpu.core_type<tc>, window_params = [{transform_indices = @transform_0, window_bounds = array<i64: 1, 16, 256>}, {pipeline_mode = #tpu.pipeline_mode<synchronous>, transform_indices = @transform_1, window_bounds = array<i64: 1, 256>}, {pipeline_mode = #tpu.pipeline_mode<synchronous>, transform_indices = @transform_2, window_bounds = array<i64: 8, 256>}, {pipeline_mode = #tpu.pipeline_mode<synchronous>, transform_indices = @transform_3, window_bounds = array<i64: 16, 1>}, {pipeline_mode = #tpu.pipeline_mode<synchronous>, transform_indices = @transform_4, window_bounds = array<i64: 16, 1>}, {pipeline_mode = #tpu.pipeline_mode<synchronous>, transform_indices = @transform_5, window_bounds = array<i64: 16, 1>}, {pipeline_mode = #tpu.pipeline_mode<synchronous>, transform_indices = @transform_6, window_bounds = array<i64: 16, 1>}, {pipeline_mode = #tpu.pipeline_mode<synchronous>, transform_indices = @transform_7, window_bounds = array<i64: 64, 16>}, {pipeline_mode = #tpu.pipeline_mode<synchronous>, transform_indices = @transform_8, window_bounds = array<i64: 64, 1>}, {pipeline_mode = #tpu.pipeline_mode<synchronous>, transform_indices = @transform_9, window_bounds = array<i64: 16, 64>}, {pipeline_mode = #tpu.pipeline_mode<synchronous>, transform_indices = @transform_10, window_bounds = array<i64: 16, 1>}, {transform_indices = @transform_11, window_bounds = array<i64: 1, 16, 256>}]} {
    %c0 = arith.constant 0 : index
    %c0_0 = arith.constant 0 : index
    %c0_1 = arith.constant 0 : index
    %0 = vector.load %arg1[%c0, %c0_0, %c0_1] : memref<1x16x256xf32, #tpu.memory_space<vmem>>, vector<1x16x256xf32>
    %1 = vector.shape_cast %0 : vector<1x16x256xf32> to vector<16x256xf32>
    %2 = vector.shape_cast %1 : vector<16x256xf32> to vector<1x16x256xf32>
    %cst = arith.constant dense<0.000000e+00> : vector<1xf32>
    %3 = vector.multi_reduction <add>, %2, %cst [1, 2] : vector<1x16x256xf32> to vector<1xf32>
    %4 = vector.shape_cast %3 : vector<1xf32> to vector<1x1x1xf32>
    %5 = vector.extract %4[0, 0, 0] : f32 from vector<1x1x1xf32>
    %cst_2 = arith.constant 2.44140625E-4 : f32
    %6 = arith.mulf %5, %cst_2 : f32
    %7 = arith.mulf %1, %1 : vector<16x256xf32>
    %8 = vector.shape_cast %7 : vector<16x256xf32> to vector<1x16x256xf32>
    %cst_3 = arith.constant dense<0.000000e+00> : vector<1xf32>
    %9 = vector.multi_reduction <add>, %8, %cst_3 [1, 2] : vector<1x16x256xf32> to vector<1xf32>
    %10 = vector.shape_cast %9 : vector<1xf32> to vector<1x1x1xf32>
    %11 = vector.extract %10[0, 0, 0] : f32 from vector<1x1x1xf32>
    %cst_4 = arith.constant 2.44140625E-4 : f32
    %12 = arith.mulf %11, %cst_4 : f32
    %13 = arith.mulf %6, %6 : f32
    %14 = arith.subf %12, %13 : f32
    %cst_5 = arith.constant 9.99999974E-6 : f32
    %15 = arith.addf %14, %cst_5 : f32
    %16 = math.rsqrt %15 : f32
    %c0_6 = arith.constant 0 : index
    %c0_7 = arith.constant 0 : index
    %17 = vector.load %arg4[%c0_6, %c0_7] : memref<16x1xf32, #tpu.memory_space<vmem>>, vector<16x1xf32>
    %18 = vector.broadcast %16 : f32 to vector<16x1xf32>
    %19 = arith.mulf %17, %18 : vector<16x1xf32>
    %c0_8 = arith.constant 0 : index
    %c0_9 = arith.constant 0 : index
    %20 = vector.load %arg5[%c0_8, %c0_9] : memref<16x1xf32, #tpu.memory_space<vmem>>, vector<16x1xf32>
    %21 = vector.broadcast %6 : f32 to vector<16x1xf32>
    %22 = arith.mulf %21, %19 : vector<16x1xf32>
    %23 = arith.subf %20, %22 : vector<16x1xf32>
    %24 = vector.broadcast %19 : vector<16x1xf32> to vector<16x256xf32>
    %25 = arith.mulf %1, %24 : vector<16x256xf32>
    %26 = vector.broadcast %23 : vector<16x1xf32> to vector<16x256xf32>
    %27 = arith.addf %25, %26 : vector<16x256xf32>
    %c1_i32 = arith.constant 1 : i32
    %28 = tpu.dynamic_rotate %27 by %c1_i32 dim 1 : vector<16x256xf32>, i32 -> vector<16x256xf32>
    %c0_10 = arith.constant 0 : index
    %c0_11 = arith.constant 0 : index
    %29 = vector.load %arg3[%c0_10, %c0_11] : memref<8x256xf32, #tpu.memory_space<vmem>>, vector<1x256xf32>
    %30 = vector.broadcast %29 : vector<1x256xf32> to vector<16x256xf32>
    %31 = arith.mulf %28, %30 : vector<16x256xf32>
    %32 = arith.addf %27, %31 : vector<16x256xf32>
    %c255_i32 = arith.constant 255 : i32
    %33 = tpu.dynamic_rotate %27 by %c255_i32 dim 1 : vector<16x256xf32>, i32 -> vector<16x256xf32>
    %c1 = arith.constant 1 : index
    %c0_12 = arith.constant 0 : index
    %34 = vector.load %arg3[%c1, %c0_12] : memref<8x256xf32, #tpu.memory_space<vmem>>, vector<1x256xf32>
    %35 = vector.broadcast %34 : vector<1x256xf32> to vector<16x256xf32>
    %36 = arith.mulf %33, %35 : vector<16x256xf32>
    %37 = arith.addf %32, %36 : vector<16x256xf32>
    %c16_i32 = arith.constant 16 : i32
    %38 = tpu.dynamic_rotate %37 by %c16_i32 dim 1 : vector<16x256xf32>, i32 -> vector<16x256xf32>
    %c2 = arith.constant 2 : index
    %c0_13 = arith.constant 0 : index
    %39 = vector.load %arg3[%c2, %c0_13] : memref<8x256xf32, #tpu.memory_space<vmem>>, vector<1x256xf32>
    %40 = vector.broadcast %39 : vector<1x256xf32> to vector<16x256xf32>
    %41 = arith.mulf %38, %40 : vector<16x256xf32>
    %42 = arith.addf %37, %41 : vector<16x256xf32>
    %c240_i32 = arith.constant 240 : i32
    %43 = tpu.dynamic_rotate %37 by %c240_i32 dim 1 : vector<16x256xf32>, i32 -> vector<16x256xf32>
    %c3 = arith.constant 3 : index
    %c0_14 = arith.constant 0 : index
    %44 = vector.load %arg3[%c3, %c0_14] : memref<8x256xf32, #tpu.memory_space<vmem>>, vector<1x256xf32>
    %45 = vector.broadcast %44 : vector<1x256xf32> to vector<16x256xf32>
    %46 = arith.mulf %43, %45 : vector<16x256xf32>
    %47 = arith.addf %42, %46 : vector<16x256xf32>
    %c0_15 = arith.constant 0 : index
    %c0_16 = arith.constant 0 : index
    %48 = vector.load %arg2[%c0_15, %c0_16] : memref<1x256xf32, #tpu.memory_space<vmem>>, vector<1x256xf32>
    %49 = vector.broadcast %48 : vector<1x256xf32> to vector<16x256xf32>
    %50 = arith.mulf %47, %49 : vector<16x256xf32>
    %51 = arith.addf %1, %50 : vector<16x256xf32>
    %52 = arith.subf %51, %27 : vector<16x256xf32>
    %53 = vector.shape_cast %52 : vector<16x256xf32> to vector<1x16x256xf32>
    %cst_17 = arith.constant dense<0.000000e+00> : vector<1xf32>
    %54 = vector.multi_reduction <add>, %53, %cst_17 [1, 2] : vector<1x16x256xf32> to vector<1xf32>
    %55 = vector.shape_cast %54 : vector<1xf32> to vector<1x1x1xf32>
    %56 = vector.extract %55[0, 0, 0] : f32 from vector<1x1x1xf32>
    %cst_18 = arith.constant 2.44140625E-4 : f32
    %57 = arith.mulf %56, %cst_18 : f32
    %58 = arith.mulf %52, %52 : vector<16x256xf32>
    %59 = vector.shape_cast %58 : vector<16x256xf32> to vector<1x16x256xf32>
    %cst_19 = arith.constant dense<0.000000e+00> : vector<1xf32>
    %60 = vector.multi_reduction <add>, %59, %cst_19 [1, 2] : vector<1x16x256xf32> to vector<1xf32>
    %61 = vector.shape_cast %60 : vector<1xf32> to vector<1x1x1xf32>
    %62 = vector.extract %61[0, 0, 0] : f32 from vector<1x1x1xf32>
    %cst_20 = arith.constant 2.44140625E-4 : f32
    %63 = arith.mulf %62, %cst_20 : f32
    %64 = arith.mulf %57, %57 : f32
    %65 = arith.subf %63, %64 : f32
    %cst_21 = arith.constant 9.99999974E-6 : f32
    %66 = arith.addf %65, %cst_21 : f32
    %67 = math.rsqrt %66 : f32
    %c0_22 = arith.constant 0 : index
    %c0_23 = arith.constant 0 : index
    %68 = vector.load %arg6[%c0_22, %c0_23] : memref<16x1xf32, #tpu.memory_space<vmem>>, vector<16x1xf32>
    %69 = vector.broadcast %67 : f32 to vector<16x1xf32>
    %70 = arith.mulf %68, %69 : vector<16x1xf32>
    %c0_24 = arith.constant 0 : index
    %c0_25 = arith.constant 0 : index
    %71 = vector.load %arg7[%c0_24, %c0_25] : memref<16x1xf32, #tpu.memory_space<vmem>>, vector<16x1xf32>
    %72 = vector.broadcast %57 : f32 to vector<16x1xf32>
    %73 = arith.mulf %72, %70 : vector<16x1xf32>
    %74 = arith.subf %71, %73 : vector<16x1xf32>
    %75 = vector.broadcast %70 : vector<16x1xf32> to vector<16x256xf32>
    %76 = arith.mulf %52, %75 : vector<16x256xf32>
    %77 = vector.broadcast %74 : vector<16x1xf32> to vector<16x256xf32>
    %78 = arith.addf %76, %77 : vector<16x256xf32>
    %c0_26 = arith.constant 0 : index
    %c0_27 = arith.constant 0 : index
    %79 = vector.load %arg8[%c0_26, %c0_27] : memref<64x16xf32, #tpu.memory_space<vmem>>, vector<64x16xf32>
    %c0_28 = arith.constant 0 : index
    %c0_29 = arith.constant 0 : index
    %80 = vector.load %arg9[%c0_28, %c0_29] : memref<64x1xf32, #tpu.memory_space<vmem>>, vector<64x1xf32>
    %c0_30 = arith.constant 0 : index
    %c0_31 = arith.constant 0 : index
    %81 = vector.load %arg10[%c0_30, %c0_31] : memref<16x64xf32, #tpu.memory_space<vmem>>, vector<16x64xf32>
    %c0_32 = arith.constant 0 : index
    %c0_33 = arith.constant 0 : index
    %82 = vector.load %arg11[%c0_32, %c0_33] : memref<16x1xf32, #tpu.memory_space<vmem>>, vector<16x1xf32>
    %cst_34 = arith.constant dense<0.000000e+00> : vector<64x256xf32>
    %83 = tpu.matmul %79, %78, %cst_34 {dimension_numbers = #tpu.dot_dimension_numbers<[1], [0], [0], [1], [0, 0, 1, 1], [], []>} : vector<64x16xf32>, vector<16x256xf32>, vector<64x256xf32> -> vector<64x256xf32>
    %84 = vector.broadcast %80 : vector<64x1xf32> to vector<64x256xf32>
    %85 = arith.addf %83, %84 : vector<64x256xf32>
    %cst_35 = arith.constant 5.000000e-01 : f32
    %86 = vector.broadcast %cst_35 : f32 to vector<64x256xf32>
    %87 = arith.mulf %86, %85 : vector<64x256xf32>
    %cst_36 = arith.constant 0.707106769 : f32
    %88 = vector.broadcast %cst_36 : f32 to vector<64x256xf32>
    %89 = arith.mulf %85, %88 : vector<64x256xf32>
    %cst_37 = arith.constant 0.000000e+00 : f32
    %90 = vector.broadcast %cst_37 : f32 to vector<64x256xf32>
    %91 = arith.cmpf oge, %89, %90 : vector<64x256xf32>
    %cst_38 = arith.constant 1.000000e+00 : f32
    %cst_39 = arith.constant -1.000000e+00 : f32
    %92 = vector.broadcast %cst_38 : f32 to vector<64x256xf32>
    %93 = vector.broadcast %cst_39 : f32 to vector<64x256xf32>
    %94 = arith.select %91, %92, %93 : vector<64x256xi1>, vector<64x256xf32>
    %95 = math.absf %89 : vector<64x256xf32>
    %cst_40 = arith.constant 0.327591091 : f32
    %96 = vector.broadcast %cst_40 : f32 to vector<64x256xf32>
    %97 = arith.mulf %96, %95 : vector<64x256xf32>
    %cst_41 = arith.constant 1.000000e+00 : f32
    %98 = vector.broadcast %cst_41 : f32 to vector<64x256xf32>
    %99 = arith.addf %98, %97 : vector<64x256xf32>
    %100 = tpu.reciprocal %99 {approx = true} : vector<64x256xf32> -> vector<64x256xf32>
    %cst_42 = arith.constant 1.06140542 : f32
    %101 = vector.broadcast %cst_42 : f32 to vector<64x256xf32>
    %102 = arith.mulf %101, %100 : vector<64x256xf32>
    %cst_43 = arith.constant -1.45315206 : f32
    %103 = vector.broadcast %cst_43 : f32 to vector<64x256xf32>
    %104 = arith.addf %102, %103 : vector<64x256xf32>
    %105 = arith.mulf %104, %100 : vector<64x256xf32>
    %cst_44 = arith.constant 1.42141378 : f32
    %106 = vector.broadcast %cst_44 : f32 to vector<64x256xf32>
    %107 = arith.addf %105, %106 : vector<64x256xf32>
    %108 = arith.mulf %107, %100 : vector<64x256xf32>
    %cst_45 = arith.constant -0.284496725 : f32
    %109 = vector.broadcast %cst_45 : f32 to vector<64x256xf32>
    %110 = arith.addf %108, %109 : vector<64x256xf32>
    %111 = arith.mulf %110, %100 : vector<64x256xf32>
    %cst_46 = arith.constant 0.254829586 : f32
    %112 = vector.broadcast %cst_46 : f32 to vector<64x256xf32>
    %113 = arith.addf %111, %112 : vector<64x256xf32>
    %114 = arith.mulf %113, %100 : vector<64x256xf32>
    %cst_47 = arith.constant 0.000000e+00 : f32
    %115 = vector.broadcast %cst_47 : f32 to vector<64x256xf32>
    %116 = arith.subf %115, %95 : vector<64x256xf32>
    %117 = arith.mulf %116, %95 : vector<64x256xf32>
    %118 = math.exp %117 : vector<64x256xf32>
    %119 = arith.mulf %114, %118 : vector<64x256xf32>
    %cst_48 = arith.constant 1.000000e+00 : f32
    %120 = vector.broadcast %cst_48 : f32 to vector<64x256xf32>
    %121 = arith.subf %120, %119 : vector<64x256xf32>
    %122 = arith.mulf %94, %121 : vector<64x256xf32>
    %cst_49 = arith.constant 1.000000e+00 : f32
    %123 = vector.broadcast %cst_49 : f32 to vector<64x256xf32>
    %124 = arith.addf %123, %122 : vector<64x256xf32>
    %125 = arith.mulf %87, %124 : vector<64x256xf32>
    %cst_50 = arith.constant dense<0.000000e+00> : vector<16x256xf32>
    %126 = tpu.matmul %81, %125, %cst_50 {dimension_numbers = #tpu.dot_dimension_numbers<[1], [0], [0], [1], [0, 0, 1, 1], [], []>} : vector<16x64xf32>, vector<64x256xf32>, vector<16x256xf32> -> vector<16x256xf32>
    %127 = vector.broadcast %82 : vector<16x1xf32> to vector<16x256xf32>
    %128 = arith.addf %126, %127 : vector<16x256xf32>
    %129 = arith.addf %52, %128 : vector<16x256xf32>
    %c0_51 = arith.constant 0 : index
    %c0_52 = arith.constant 0 : index
    %c0_53 = arith.constant 0 : index
    %130 = vector.load %arg12[%c0_51, %c0_52, %c0_53] : memref<1x16x256xf32, #tpu.memory_space<vmem>>, vector<1x16x256xf32>
    %131 = vector.shape_cast %130 : vector<1x16x256xf32> to vector<16x256xf32>
    %132 = vector.shape_cast %129 : vector<16x256xf32> to vector<1x16x256xf32>
    tpu.vector_store %arg12[%c0_51, %c0_52, %c0_53], %132 {strides = array<i32>} : memref<1x16x256xf32, #tpu.memory_space<vmem>>, vector<1x16x256xf32>,
    return
  }
  func.func @transform_0(%arg0: i32) -> (i32, i32, i32) {
    %c0_i32 = arith.constant 0 : i32
    %c0_i32_0 = arith.constant 0 : i32
    %c0_i32_1 = arith.constant 0 : i32
    return %arg0, %c0_i32, %c0_i32_0 : i32, i32, i32
  }
  func.func @transform_1(%arg0: i32) -> (i32, i32) {
    %c0_i32 = arith.constant 0 : i32
    %c0_i32_0 = arith.constant 0 : i32
    %c0_i32_1 = arith.constant 0 : i32
    return %c0_i32, %c0_i32_0 : i32, i32
  }
  func.func @transform_2(%arg0: i32) -> (i32, i32) {
    %c0_i32 = arith.constant 0 : i32
    %c0_i32_0 = arith.constant 0 : i32
    %c0_i32_1 = arith.constant 0 : i32
    return %c0_i32, %c0_i32_0 : i32, i32
  }
  func.func @transform_3(%arg0: i32) -> (i32, i32) {
    %c0_i32 = arith.constant 0 : i32
    %c0_i32_0 = arith.constant 0 : i32
    %c0_i32_1 = arith.constant 0 : i32
    return %c0_i32, %c0_i32_0 : i32, i32
  }
  func.func @transform_4(%arg0: i32) -> (i32, i32) {
    %c0_i32 = arith.constant 0 : i32
    %c0_i32_0 = arith.constant 0 : i32
    %c0_i32_1 = arith.constant 0 : i32
    return %c0_i32, %c0_i32_0 : i32, i32
  }
  func.func @transform_5(%arg0: i32) -> (i32, i32) {
    %c0_i32 = arith.constant 0 : i32
    %c0_i32_0 = arith.constant 0 : i32
    %c0_i32_1 = arith.constant 0 : i32
    return %c0_i32, %c0_i32_0 : i32, i32
  }
  func.func @transform_6(%arg0: i32) -> (i32, i32) {
    %c0_i32 = arith.constant 0 : i32
    %c0_i32_0 = arith.constant 0 : i32
    %c0_i32_1 = arith.constant 0 : i32
    return %c0_i32, %c0_i32_0 : i32, i32
  }
  func.func @transform_7(%arg0: i32) -> (i32, i32) {
    %c0_i32 = arith.constant 0 : i32
    %c0_i32_0 = arith.constant 0 : i32
    %c0_i32_1 = arith.constant 0 : i32
    return %c0_i32, %c0_i32_0 : i32, i32
  }
  func.func @transform_8(%arg0: i32) -> (i32, i32) {
    %c0_i32 = arith.constant 0 : i32
    %c0_i32_0 = arith.constant 0 : i32
    %c0_i32_1 = arith.constant 0 : i32
    return %c0_i32, %c0_i32_0 : i32, i32
  }
  func.func @transform_9(%arg0: i32) -> (i32, i32) {
    %c0_i32 = arith.constant 0 : i32
    %c0_i32_0 = arith.constant 0 : i32
    %c0_i32_1 = arith.constant 0 : i32
    return %c0_i32, %c0_i32_0 : i32, i32
  }
  func.func @transform_10(%arg0: i32) -> (i32, i32) {
    %c0_i32 = arith.constant 0 : i32
    %c0_i32_0 = arith.constant 0 : i32
    %c0_i32_1 = arith.constant 0 : i32
    return %c0_i32, %c0_i32_0 : i32, i32
  }
  func.func @transform_11(%arg0: i32) -> (i32, i32, i32) {
    %c0_i32 = arith.constant 0 : i32
    %c0_i32_0 = arith.constant 0 : i32
    %c0_i32_1 = arith.constant 0 : i32
    return %arg0, %c0_i32, %c0_i32_0 : i32, i32, i32
  }
}

</mosaic_0001>

<bundles_post_ra>
// kernel: tpu_custom_call.1
= control target key start
LH: loop header
LB: loop body
LE: loop exit
PB: predicated region body
PF: predicated region fallthrough
CT: control target
= control target key end

     0   :  { %s2566_s0 = inlined_call_operand.vmem [shape: f32[2,16,256], index: 0, kind: input, shape index: {}]   ;;  %s2567_s1 = inlined_call_operand.vmem [shape: f32[1,256], index: 1, kind: input, shape index: {}]   ;;  %s2568_s2 = inlined_call_operand.vmem [shape: f32[8,256], index: 2, kind: input, shape index: {}]   ;;  %s2569_s3 = inlined_call_operand.vmem [shape: f32[16,1], index: 3, kind: input, shape index: {}]   ;;  %s2570_s4 = inlined_call_operand.vmem [shape: f32[16,1], index: 4, kind: input, shape index: {}]   ;;  %s2571_s5 = inlined_call_operand.vmem [shape: f32[16,1], index: 5, kind: input, shape index: {}]   ;;  %s2572_s6 = inlined_call_operand.vmem [shape: f32[16,1], index: 6, kind: input, shape index: {}]   ;;  %s2573_s7 = inlined_call_operand.vmem [shape: f32[64,16], index: 7, kind: input, shape index: {}]   ;;  %s2574_s8 = inlined_call_operand.vmem [shape: f32[64,1], index: 8, kind: input, shape index: {}]   ;;  %s2575_s9 = inlined_call_operand.vmem [shape: f32[16,64], index: 9, kind: input, shape index: {}]   ;;  %s2576_s10 = inlined_call_operand.vmem [shape: f32[16,1], index: 10, kind: input, shape index: {}]   ;;  %s2577_s11 = inlined_call_operand.hbm [shape: f32[2,16,256], index: 11, kind: output, shape index: {}]  }
   0x1   :  { %2588 = sst [smem:[#allocation16_spill]] %s2566_s0 }
   0x2   :  { %16 = vsyncpa [#allocation3], 0 }
   0x3   :  { %18 = vsyncpa [#allocation3 + $0x1], 0  ;;  %s1803_s17 = smov 0   ;;  %s1805_s18 = smov 0  }
   0x4   :  { %s1807_s19 = smov 0   ;;  %s1809_s20 = smov 0  }
   0x5 LB: > { %s1824_s21 = sadd.s32 4294967295, %s1732_s20   ;;  %s1494_s22 = sadd.s32 4294967294, %s1732_s20   ;;  %s1732_s20 = sphi %s1809_s20, %s2620_s20   ;;  %s1728_s19 = sphi %s1807_s19, %s2619_s19   ;;  %s1724_s18 = sphi %s1805_s18, %s2618_s18   ;;  %s1720_s17 = sphi %s1803_s17, %s2617_s17  }
   0x6   : > { %s1828_s23 = sadd.s32 1, %s1732_s20   ;;  %s267_s24 = sadd.s32 1, %s1728_s19 }
   0x7   : > { %s264_s25 = ssub.s32 %s1732_s20, %s1828_s23  ;;  %p277_p0 = scmp.ne.s32.totalorder %s1728_s19, %s1724_s18 }
   0x8   : > { %p265_p1 = scmp.eq.s32.totalorder %s264_s25, 0  ;;  %p278_p2 = scmp.eq.s32.totalorder %s1824_s21, 1 }
   0x9   : > { %p283_p3 = scmp.ne.s32.totalorder %s1724_s18, %s1720_s17  ;;  %p284_p4 = scmp.eq.s32.totalorder %s1494_s22, 1 }
   0xa   : > { %s1839_s26 = scalar_select %p265_p1, %s1728_s19, %s267_s24  }
   0xb   : > { %p1841_p5 = por %p278_p2, %p277_p0  ;;  %p1845_p6 = por %p284_p4, %p283_p3 }
   0xc   : > { %2589 = sst [smem:[#allocation5_spill]] %s1839_s26  ;;  %p1497_p7 = scmp.ge.s32.totalorder %s1732_s20, 1 }
   0xd   : > { %p340_p8 = scmp.lt.s32.totalorder %s1732_s20, 3 }
   0xf   : > { %p341_p9 = pnand %p1497_p7, %p340_p8 }
  0x11   : > { %344 = sbr.rel (%p341_p9) target bundleno = 1730 (0x6c2), region = 64 }
  0x18   : > { %p380_p10 = scmp.lt.s32.totalorder %s1824_s21, 1  ;;  %s2592_s0 = sld [smem:[#allocation16_spill]]  ;;  %v1734_v24 = vmov 0   ;;  %v426_v31 = vld [vmem:[%s2569_s3 + $0x8] sm:$0xff]  ;;  %v425_v32 = vld [vmem:[%s2569_s3] sm:$0xff]  ;;  %v473_v56 = vlaneseq  ;;  %vm762_vm4 = vcmask 130048  }
  0x19   : > { %1600 = vset.pattern.permute.xlu1 %v1734_v24  ;;  %1601 = vset.pattern.permute.xlu0 %v1734_v24  ;;  %v430_v37 = vld [vmem:[%s2570_s4] sm:$0xff]  ;;  %v431_v41 = vld [vmem:[%s2570_s4 + $0x8] sm:$0xff]  ;;  %s2578_s13 = smov 16  }
  0x1a   : > { %s381_s29 = scalar_select %p380_p10, %s1824_s21, 1  ;;  %v483_v58 = vshrl.u32 %v473_v56, 7  ;;  %v1908_v59 = vand.u32 127, %v473_v56  ;;  %v480_v62 = vld [vmem:[%s2568_s2] ss:$8 sm:$0x3] }
  0x1c   : > { %s1519_s30 = sshll.u32 %s381_s29, 5  ;;  %v1910_v61 = vsub.s32 0, %v483_v58  ;;  %vm475_vm0 = vcmp.lt.s32.totalorder %v1908_v59, 1  ;;  %vm508_vm1 = vcmp.lt.s32.totalorder %v1908_v59, 127  ;;  %vm542_vm2 = vcmp.lt.s32.totalorder %v1908_v59, 16 }
  0x1d   : > { %vm576_vm3 = vcmp.lt.s32.totalorder %v1908_v59, 112 }
  0x1e   : > { %s384_s14 = scalar_lea.vmem %s2592_s0, %s1519_s30  ;;  %s1735_s0 = smov 1  }
  0x1f   : > { %v1856_v0 = vld [vmem:[%s384_s14] sm:$0xff]  ;;  %v1858_v1 = vld [vmem:[%s384_s14 + $0x8] sm:$0xff]  ;;  %v1860_v2 = vld [vmem:[%s384_s14 + $0x10] sm:$0xff] }
  0x20   : > { %v389_v3 = vadd.f32 %v1858_v1, %v1856_v0  ;;  %v402_v4 = vmul.f32 %v1856_v0, %v1856_v0  ;;  %v403_v5 = vmul.f32 %v1858_v1, %v1858_v1  ;;  %v404_v6 = vmul.f32 %v1860_v2, %v1860_v2  ;;  %v1870_v7 = vld [vmem:[%s384_s14 + $0x18] sm:$0xff]  ;;  %s1738_s14 = smov 112  }
  0x21   : > { %v405_v9 = vmul.f32 %v1870_v7, %v1870_v7 }
  0x22   : > { %v390_v8 = vadd.f32 %v389_v3, %v1860_v2  ;;  %v406_v10 = vadd.f32 %v403_v5, %v402_v4  ;;  %v485_v3 = vrot.slane %v480_v62, %v1910_v61  ;;  %v1917_v4 = vsub.s32 1, %v483_v58 }
  0x24   : > { %v391_v11 = vadd.f32 %v390_v8, %v1870_v7  ;;  %v407_v12 = vadd.f32 %v406_v10, %v404_v6  ;;  %v1501_v6 = vld [vmem:[%s2568_s2 + $0x1] ss:$8 sm:$0x3] }
  0x26   : > { %392 = vadd.xlane.f32.xlu0 %v391_v11  ;;  %v408_v13 = vadd.f32 %v407_v12, %v405_v9  ;;  %v489_v9 = vrot.slane %v480_v62, %v1917_v4  ;;  %v519_v11 = vrot.slane %v1501_v6, %v1910_v61 }
  0x2a   : > { %409 = vadd.xlane.f32.xlu0 %v408_v13  ;;  %v523_v13 = vrot.slane %v1501_v6, %v1917_v4 }
  0xb3   : > { %v393_v14 = vpop.xlane.xlu0 %392 }
  0xb4   : > { %v394_v15 = vrot.slane %v393_v14, 4 }
  0xb6   : > { %v395_v16 = vadd.f32 %v394_v15, %v393_v14 }
  0xb7   : > { %v410_v17 = vpop.xlane.xlu0 %409 }
  0xb8   : > { %v396_v18 = vrot.slane %v395_v16, 2  ;;  %v411_v19 = vrot.slane %v410_v17, 4 }
  0xba   : > { %v412_v20 = vadd.f32 %v411_v19, %v410_v17  ;;  %v397_v21 = vadd.f32 %v396_v18, %v395_v16 }
  0xbc   : > { %v413_v22 = vrot.slane %v412_v20, 2  ;;  %v398_v23 = vrot.slane %v397_v21, 1 }
  0xbe   : > { %v399_v25 = vadd.f32 %v398_v23, %v397_v21  ;;  %v414_v26 = vadd.f32 %v413_v22, %v412_v20 }
  0xc0   : > { %1541 = vpush %v399_v25  ;;  %v415_v27 = vrot.slane %v414_v26, 1 }
  0xc2   : > { %v416_v28 = vadd.f32 %v415_v27, %v414_v26 }
  0xc4   : > { %1543 = vpush %v416_v28 }
  0xf1   : > { %s1542_s15 = spop %1541 }
  0xf2   : > { %s401_s16 = smul.f32 0.00024414063, %s1542_s15 }
  0xf4   : > { %s419_s22 = smul.f32 %s401_s16, %s401_s16  ;;  %v432_v36 = vstv %s401_s16 }
  0xf5   : > { %s1544_s24 = spop %1543 }
  0xf6   : > { %s418_s25 = smul.f32 0.00024414063, %s1544_s24  ;;  %s377_s24 = sand.u32 1, %s1724_s18  }
  0xf8   : > { %s420_s29 = ssub.f32 %s418_s25, %s419_s22  ;;  %s1498_s25 = sshll.u32 %s377_s24, 5 }
  0xfa   : > { %s421_s30 = sadd.f32 1e-05, %s420_s29 }
  0xfc   : > { %v422_v29 = vstv %s421_s30 }
  0xfd   : > { %1602 = vrsqrt.f32 %v422_v29 }
 0x107   : > { %v1603_v30 = vpop.eup %1602 }
 0x108   : > { %1545 = vpush %v1603_v30 }
 0x139   : > { %s1546_s26 = spop %1545 }
 0x13a   : > { %v427_v33 = vstv %s1546_s26  ;;  %s1736_s26 = smov 127  }
 0x13b   : > { %v429_v34 = vmul.f32 %v427_v33, %v426_v31  ;;  %v428_v35 = vmul.f32 %v427_v33, %v425_v32 }
 0x13d   : > { %439 = vperm.xlu1 %1600, %v428_v35   ;;  %v433_v38 = vmul.f32 %v432_v36, %v428_v35  ;;  %v434_v39 = vmul.f32 %v432_v36, %v429_v34 }
 0x13f   : > { %v435_v40 = vsub.f32 %v430_v37, %v433_v38  ;;  %v436_v42 = vsub.f32 %v431_v41, %v434_v39  ;;  %v1502_v39 = vld [vmem:[%s2568_s2 + $0x2] ss:$8 sm:$0x3] }
 0x140   : > { %v553_v41 = vrot.slane %v1502_v39, %v1910_v61 }
 0x141   : > { %444 = vperm.xlu1 %1600, %v429_v34   ;;  %453 = vperm.xlu0 %1601, %v435_v40  }
 0x145   : > { %458 = vperm.xlu1 %1600, %v436_v42   ;;  %v557_v42 = vrot.slane %v1502_v39, %v1917_v4 }
 0x1bc   : > { %v440_v43 = vpop.permute.xlu1 %439 }
 0x1bd   : > { %v447_v44 = vmul.f32 %v440_v43, %v1856_v0  ;;  %v448_v48 = vmul.f32 %v440_v43, %v1858_v1  ;;  %v1503_v43 = vld [vmem:[%s2568_s2 + $0x3] ss:$8 sm:$0x3] }
 0x1c0   : > { %v445_v45 = vpop.permute.xlu1 %444  ;;  %v454_v46 = vpop.permute.xlu0 %453 }
 0x1c1   : > { %v1889_v47 = vadd.f32 %v454_v46, %v447_v44  ;;  %v1893_v49 = vadd.f32 %v454_v46, %v448_v48  ;;  %v449_v51 = vmul.f32 %v445_v45, %v1860_v2  ;;  %v450_v53 = vmul.f32 %v445_v45, %v1870_v7 }
 0x1c3   : > { %465 = vrot.lane.b32.xlu1 %v1889_v47, %s1735_s0 }
 0x1c4   : > { %v459_v50 = vpop.permute.xlu1 %458 }
 0x1c5   : > { %v1897_v52 = vadd.f32 %v459_v50, %v449_v51  ;;  %v1901_v54 = vadd.f32 %v459_v50, %v450_v53  ;;  %v587_v50 = vrot.slane %v1503_v43, %v1910_v61  ;;  %v591_v51 = vrot.slane %v1503_v43, %v1917_v4  ;;  %v602_v53 = vld [vmem:[%s2567_s1] sm:$0x3] }
 0x1c6   : > { %v607_v62 = vrot.slane %v602_v53, %v1910_v61 }
 0x1c7   : > { %469 = vrot.lane.b32.xlu1 %v1893_v49, %s1735_s0 }
 0x1cb   : > { %467 = vrot.lane.b32.xlu1 %v1897_v52, %s1735_s0 }
 0x1cf   : > { %471 = vrot.lane.b32.xlu1 %v1901_v54, %s1735_s0  ;;  %s379_s0 = scalar_lea.vmem [#allocation2], %s1498_s25 }
 0x1d3   : > { %500 = vrot.lane.b32.xlu1 %v1889_v47, %s1736_s26 }
 0x1d7   : > { %504 = vrot.lane.b32.xlu1 %v1893_v49, %s1736_s26 }
 0x1db   : > { %502 = vrot.lane.b32.xlu1 %v1897_v52, %s1736_s26 }
 0x1df   : > { %506 = vrot.lane.b32.xlu1 %v1901_v54, %s1736_s26  ;;  %s1432_s26 = sshll.u32 %s379_s0, 4  ;;  %s2515_s26 = int_to_ptr.vmem [resolvable:$true] %s1432_s26 }
 0x235   : > { %v466_v55 = vpop.permute.xlu1 %465 }
 0x239   : > { %v470_v57 = vpop.permute.xlu1 %469 }
 0x23a   : > { %v478_v5 = vsel %vm475_vm0, %v470_v57, %v466_v55  ;;  %v476_v12 = vsel %vm475_vm0, %v466_v55, %v470_v57 }
 0x23b   : > { %v492_v10 = vmul.f32 %v485_v3, %v478_v5  ;;  %v493_v17 = vmul.f32 %v489_v9, %v476_v12 }
 0x23d   : > { %v468_v60 = vpop.permute.xlu1 %467  ;;  %v496_v18 = vadd.f32 %v492_v10, %v1889_v47  ;;  %v497_v25 = vadd.f32 %v493_v17, %v1893_v49 }
 0x241   : > { %v472_v63 = vpop.permute.xlu1 %471 }
 0x242   : > { %v477_v20 = vsel %vm475_vm0, %v468_v60, %v472_v63  ;;  %v479_v21 = vsel %vm475_vm0, %v472_v63, %v468_v60  ;;  %v611_v63 = vrot.slane %v602_v53, %v1917_v4 }
 0x243   : > { %v494_v26 = vmul.f32 %v485_v3, %v479_v21  ;;  %v495_v27 = vmul.f32 %v489_v9, %v477_v20 }
 0x245   : > { %v501_v8 = vpop.permute.xlu1 %500  ;;  %v498_v32 = vadd.f32 %v494_v26, %v1897_v52  ;;  %v499_v33 = vadd.f32 %v495_v27, %v1901_v54 }
 0x249   : > { %v505_v14 = vpop.permute.xlu1 %504 }
 0x24a   : > { %v509_v15 = vsel %vm508_vm1, %v501_v8, %v505_v14  ;;  %v511_v16 = vsel %vm508_vm1, %v505_v14, %v501_v8 }
 0x24b   : > { %v526_v19 = vmul.f32 %v519_v11, %v509_v15  ;;  %v527_v22 = vmul.f32 %v523_v13, %v511_v16 }
 0x24d   : > { %v503_v23 = vpop.permute.xlu1 %502  ;;  %v530_v24 = vadd.f32 %v526_v19, %v496_v18  ;;  %v531_v29 = vadd.f32 %v527_v22, %v497_v25 }
 0x24f   : > { %534 = vrot.lane.b32.xlu1 %v530_v24, %s2578_s13 }
 0x251   : > { %v507_v28 = vpop.permute.xlu1 %506 }
 0x252   : > { %v510_v30 = vsel %vm508_vm1, %v503_v23, %v507_v28  ;;  %v512_v31 = vsel %vm508_vm1, %v507_v28, %v503_v23 }
 0x253   : > { %v528_v34 = vmul.f32 %v519_v11, %v510_v30  ;;  %v529_v35 = vmul.f32 %v523_v13, %v512_v31  ;;  %538 = vrot.lane.b32.xlu1 %v531_v29, %s2578_s13 }
 0x255   : > { %v533_v36 = vadd.f32 %v529_v35, %v499_v33  ;;  %v532_v37 = vadd.f32 %v528_v34, %v498_v32 }
 0x257   : > { %540 = vrot.lane.b32.xlu1 %v533_v36, %s2578_s13  ;;  %536 = vrot.lane.b32.xlu0 %v532_v37, %s2578_s13 }
 0x25b   : > { %572 = vrot.lane.b32.xlu1 %v531_v29, %s1738_s14  ;;  %568 = vrot.lane.b32.xlu0 %v530_v24, %s1738_s14 }
 0x25f   : > { %574 = vrot.lane.b32.xlu1 %v533_v36, %s1738_s14  ;;  %570 = vrot.lane.b32.xlu0 %v532_v37, %s1738_s14 }
 0x2c1   : > { %v535_v38 = vpop.permute.xlu1 %534 }
 0x2c5   : > { %v539_v40 = vpop.permute.xlu1 %538 }
 0x2c6   : > { %v543_v44 = vsel %vm542_vm2, %v535_v38, %v539_v40  ;;  %v545_v45 = vsel %vm542_vm2, %v539_v40, %v535_v38 }
 0x2c7   : > { %v560_v55 = vmul.f32 %v553_v41, %v545_v45  ;;  %v561_v56 = vmul.f32 %v557_v42, %v543_v44 }
 0x2c9   : > { %v537_v46 = vpop.permute.xlu0 %536  ;;  %v541_v48 = vpop.permute.xlu1 %540  ;;  %v564_v10 = vadd.f32 %v560_v55, %v530_v24  ;;  %v565_v11 = vadd.f32 %v561_v56, %v531_v29 }
 0x2ca   : > { %v544_v57 = vsel %vm542_vm2, %v537_v46, %v541_v48  ;;  %v546_v58 = vsel %vm542_vm2, %v541_v48, %v537_v46 }
 0x2cb   : > { %v562_v5 = vmul.f32 %v553_v41, %v546_v58  ;;  %v563_v6 = vmul.f32 %v557_v42, %v544_v57  ;;  %v662_v57 = vld [vmem:[%s2571_s5] sm:$0xff]  ;;  %v663_v58 = vld [vmem:[%s2571_s5 + $0x8] sm:$0xff] }
 0x2cd   : > { %v569_v60 = vpop.permute.xlu0 %568  ;;  %v573_v3 = vpop.permute.xlu1 %572  ;;  %v566_v61 = vadd.f32 %v562_v5, %v532_v37  ;;  %v567_v18 = vadd.f32 %v563_v6, %v533_v36  ;;  %v668_v5 = vld [vmem:[%s2572_s6 + $0x8] sm:$0xff]  ;;  %v667_v6 = vld [vmem:[%s2572_s6] sm:$0xff] }
 0x2ce   : > { %v577_v8 = vsel %vm576_vm3, %v569_v60, %v573_v3  ;;  %v579_v9 = vsel %vm576_vm3, %v573_v3, %v569_v60 }
 0x2cf   : > { %v594_v12 = vmul.f32 %v587_v50, %v577_v8  ;;  %v595_v13 = vmul.f32 %v591_v51, %v579_v9 }
 0x2d1   : > { %v598_v14 = vadd.f32 %v594_v12, %v564_v10  ;;  %v599_v15 = vadd.f32 %v595_v13, %v565_v11  ;;  %v571_v16 = vpop.permute.xlu0 %570  ;;  %v575_v17 = vpop.permute.xlu1 %574  ;;  %v711_v12 = vld [vmem:[%s2574_s8 + $0x8] sm:$0xff]  ;;  %v710_v13 = vld [vmem:[%s2574_s8] sm:$0xff] }
 0x2d2   : > { %v578_v4 = vsel %vm576_vm3, %v571_v16, %v575_v17  ;;  %v580_v19 = vsel %vm576_vm3, %v575_v17, %v571_v16  ;;  %v2579_v16 = vmov 0.0   ;;  %v715_v17 = vld [vmem:[%s2574_s8 + $0x28] sm:$0xff] }
 0x2d3   : > { %v614_v20 = vmul.f32 %v607_v62, %v598_v14  ;;  %v615_v21 = vmul.f32 %v611_v63, %v599_v15  ;;  %v596_v22 = vmul.f32 %v587_v50, %v578_v4  ;;  %v597_v23 = vmul.f32 %v591_v51, %v580_v19  ;;  %v713_v14 = vld [vmem:[%s2574_s8 + $0x18] sm:$0xff]  ;;  %v712_v15 = vld [vmem:[%s2574_s8 + $0x10] sm:$0xff]  ;;  %851 = vmatprep.mubr.f32.mxu0 %v2579_v16  ;;  %v721_v19 = vld [vmem:[%s2576_s10 + $0x8] sm:$0xff] }
 0x2d4   : > { %1397 = vmatprep.mubr.f32.mxu1 %v2579_v16  ;;  %v716_v4 = vld [vmem:[%s2574_s8 + $0x30] sm:$0xff] }
 0x2d5   : > { %v618_v24 = vadd.f32 %v614_v20, %v1856_v0  ;;  %v619_v25 = vadd.f32 %v615_v21, %v1858_v1  ;;  %v600_v26 = vadd.f32 %v596_v22, %v566_v61  ;;  %v601_v27 = vadd.f32 %v597_v23, %v567_v18  ;;  %v714_v61 = vld [vmem:[%s2574_s8 + $0x20] sm:$0xff]  ;;  %v717_v18 = vld [vmem:[%s2574_s8 + $0x38] sm:$0xff] }
 0x2d6   : > { %v720_v20 = vld [vmem:[%s2576_s10] sm:$0xff] }
 0x2d7   : > { %v1986_v28 = vsub.f32 %v618_v24, %v1889_v47  ;;  %v1989_v29 = vsub.f32 %v619_v25, %v1893_v49  ;;  %v616_v30 = vmul.f32 %v607_v62, %v600_v26  ;;  %v617_v31 = vmul.f32 %v611_v63, %v601_v27 }
 0x2d9   : > { %2593 = vst [vmem:[#allocation6_spill] sm:$0xff] %v1986_v28  ;;  %2594 = vst [vmem:[#allocation7_spill] sm:$0xff] %v1989_v29  ;;  %v620_v59 = vadd.f32 %v616_v30, %v1860_v2  ;;  %v621_v32 = vadd.f32 %v617_v31, %v1870_v7  ;;  %v639_v33 = vmul.f32 %v1986_v28, %v1986_v28 }
 0x2da   : > { %v640_v0 = vmul.f32 %v1989_v29, %v1989_v29  ;;  %v626_v49 = vadd.f32 %v1989_v29, %v1986_v28 }
 0x2db   : > { %v1998_v1 = vsub.f32 %v620_v59, %v1897_v52  ;;  %v2001_v47 = vsub.f32 %v621_v32, %v1901_v54 }
 0x2dc   : > { %v643_v7 = vadd.f32 %v640_v0, %v639_v33 }
 0x2dd   : > { %2595 = vst [vmem:[#allocation8_spill] sm:$0xff] %v1998_v1  ;;  %2596 = vst [vmem:[#allocation9_spill] sm:$0xff] %v2001_v47  ;;  %v627_v34 = vadd.f32 %v626_v49, %v1998_v1  ;;  %v641_v2 = vmul.f32 %v1998_v1, %v1998_v1  ;;  %v642_v36 = vmul.f32 %v2001_v47, %v2001_v47 }
 0x2df   : > { %v628_v35 = vadd.f32 %v627_v34, %v2001_v47  ;;  %v644_v37 = vadd.f32 %v643_v7, %v641_v2  ;;  %v702_v34 = vld [vmem:[%s2573_s7] sm:$0xff]  ;;  %v703_v2 = vld [vmem:[%s2573_s7 + $0x8] sm:$0xff]  ;;  %v704_v7 = vld [vmem:[%s2573_s7 + $0x10] sm:$0xff] }
 0x2e1   : > { %629 = vadd.xlane.f32.xlu0 %v628_v35  ;;  %v645_v52 = vadd.f32 %v644_v37, %v642_v36  ;;  %v705_v35 = vld [vmem:[%s2573_s7 + $0x18] sm:$0xff]  ;;  %v706_v36 = vld [vmem:[%s2573_s7 + $0x20] sm:$0xff]  ;;  %v707_v37 = vld [vmem:[%s2573_s7 + $0x28] sm:$0xff] }
 0x2e3   : > { %646 = vadd.xlane.f32.xlu1 %v645_v52  ;;  %v708_v52 = vld [vmem:[%s2573_s7 + $0x30] sm:$0xff] }
 0x36e   : > { %v630_v54 = vpop.xlane.xlu0 %629 }
 0x36f   : > { %v631_v38 = vrot.slane %v630_v54, 4 }
 0x370   : > { %v647_v39 = vpop.xlane.xlu1 %646 }
 0x371   : > { %v632_v40 = vadd.f32 %v631_v38, %v630_v54  ;;  %v648_v41 = vrot.slane %v647_v39, 4  ;;  %v709_v54 = vld [vmem:[%s2573_s7 + $0x38] sm:$0xff] }
 0x373   : > { %v633_v42 = vrot.slane %v632_v40, 2  ;;  %v649_v43 = vadd.f32 %v648_v41, %v647_v39 }
 0x375   : > { %v650_v44 = vrot.slane %v649_v43, 2  ;;  %v634_v45 = vadd.f32 %v633_v42, %v632_v40 }
 0x377   : > { %v635_v46 = vrot.slane %v634_v45, 1  ;;  %v651_v48 = vadd.f32 %v650_v44, %v649_v43 }
 0x379   : > { %v636_v50 = vadd.f32 %v635_v46, %v634_v45  ;;  %v652_v51 = vrot.slane %v651_v48, 1 }
 0x37b   : > { %1547 = vpush %v636_v50  ;;  %v653_v53 = vadd.f32 %v652_v51, %v651_v48 }
 0x37d   : > { %1549 = vpush %v653_v53 }
 0x3ac   : > { %s1548_s16 = spop %1547 }
 0x3ad   : > { %s638_s29 = smul.f32 0.00024414063, %s1548_s16  ;;  %s1520_s16 = sshll.u32 %s1824_s21, 9 }
 0x3ae   : > { %s1550_s30 = spop %1549  ;;  %s1670_s21 = scalar_lea.vmem %s2515_s26, 512 }
 0x3af   : > { %s656_s12 = smul.f32 %s638_s29, %s638_s29  ;;  %v669_v3 = vstv %s638_s29  ;;  %p1671_p11 = scmp.ne.s32.totalorder %s2515_s26, %s1670_s21 }
 0x3b0   : > { %s655_s14 = smul.f32 0.00024414063, %s1550_s30 }
 0x3b1   : > { %p1672_p12 = pnand %p1671_p11, %p1841_p5 }
 0x3b2   : > { %s657_s15 = ssub.f32 %s655_s14, %s656_s12  ;;  %s2522_s14 = scalar_lea.hbm %s2577_s11, %s1520_s16 }
 0x3b3   : > { %p1673_p13 = pneg %p1672_p12 }
 0x3b4   : > { %s658_s22 = sadd.f32 1e-05, %s657_s15  ;;  %s1741_s15 = smov [#allocation2]  }
 0x3b5   : > { %s1674_s29 = sshll.u32 %s1741_s15, 4  ;;  %s1675_s29 = int_to_ptr.vmem [resolvable:$false] %s1674_s29 }
 0x3b6   : > { %v659_v55 = vstv %s658_s22  ;;  %s1676_s22 = scalar_lea.vmem %s1675_s29, 1024  ;;  %p1677_p0 = scmp.lt.s32.totalorder %s2515_s26, %s1675_s29 }
 0x3b7   : > { %1604 = vrsqrt.f32 %v659_v55  ;;  %p1678_p1 = scmp.lt.s32.totalorder %s1676_s22, %s1670_s21 }
 0x3b9   : > { %p1679_p2 = por %p1678_p1, %p1677_p0 }
 0x3bb   : > { %p1680_p3 = pnand %p1679_p2, %p1673_p13 }
 0x3c1   : > { %v1605_v56 = vpop.eup %1604 }
 0x3c2   : > { %1551 = vpush %v1605_v56 }
 0x3f3   : > { %s1552_s13 = spop %1551 }
 0x3f4   : > { %v664_v60 = vstv %s1552_s13  ;;  %s2524_s13 = scalar_lea.sflag [#allocation3], %s377_s24 }
 0x3f5   : > { %v665_v62 = vmul.f32 %v664_v60, %v662_v57  ;;  %v666_v63 = vmul.f32 %v664_v60, %v663_v58 }
 0x3f7   : > { %v670_v8 = vmul.f32 %v669_v3, %v665_v62  ;;  %v671_v9 = vmul.f32 %v669_v3, %v666_v63  ;;  %681 = vperm.xlu1 %1600, %v666_v63   ;;  %676 = vperm.xlu0 %1601, %v665_v62  }
 0x3f9   : > { %v673_v10 = vsub.f32 %v668_v5, %v671_v9  ;;  %v672_v11 = vsub.f32 %v667_v6, %v670_v8 }
 0x3fb   : > { %695 = vperm.xlu1 %1600, %v673_v10   ;;  %690 = vperm.xlu0 %1601, %v672_v11  }
 0x3ff   : > { %729 = vperm.xlu1 %1600, %v711_v12   ;;  %724 = vperm.xlu0 %1601, %v710_v13  }
 0x403   : > { %739 = vperm.xlu1 %1600, %v713_v14   ;;  %734 = vperm.xlu0 %1601, %v712_v15  }
 0x407   : > { %749 = vperm.xlu1 %1600, %v715_v17   ;;  %744 = vperm.xlu0 %1601, %v714_v61  }
 0x40b   : > { %759 = vperm.xlu1 %1600, %v717_v18   ;;  %754 = vperm.xlu0 %1601, %v716_v4  }
 0x40f   : > { %1323 = vperm.xlu1 %1600, %v721_v19   ;;  %1318 = vperm.xlu0 %1601, %v720_v20  }
 0x476   : > { %v682_v21 = vpop.permute.xlu1 %681  ;;  %v677_v22 = vpop.permute.xlu0 %676 }
 0x477   : > { %v686_v23 = vmul.f32 %v682_v21, %v1998_v1  ;;  %v687_v24 = vmul.f32 %v682_v21, %v2001_v47  ;;  %v684_v25 = vmul.f32 %v677_v22, %v1986_v28  ;;  %v685_v26 = vmul.f32 %v677_v22, %v1989_v29 }
 0x47a   : > { %v696_v27 = vpop.permute.xlu1 %695  ;;  %v691_v30 = vpop.permute.xlu0 %690 }
 0x47b   : > { %v700_v31 = vadd.f32 %v696_v27, %v686_v23  ;;  %v701_v59 = vadd.f32 %v696_v27, %v687_v24  ;;  %v698_v32 = vadd.f32 %v691_v30, %v684_v25  ;;  %v699_v33 = vadd.f32 %v691_v30, %v685_v26 }
 0x47c   : > { %v2580_v30 = vmov -1.0  }
 0x47d   : > { %v1521_v0 = vpack.c.bf16 %v701_v59, %v699_v33  ;;  %v1523_v49 = vpack.c.bf16 %v700_v31, %v698_v32 }
 0x47e   : > { %v725_v38 = vpop.permute.xlu0 %724  ;;  %v730_v44 = vpop.permute.xlu1 %729 }
 0x47f   : > { %1522 = vmatprep.subr.bf16.mxu0 %v1521_v0 }
 0x480   : > { %1524 = vmatpush1.bf16.msra.mxu0 %v1523_v49 }
 0x482   : > { %v735_v63 = vpop.permute.xlu0 %734  ;;  %v740_v15 = vpop.permute.xlu1 %739 }
 0x483   : > { %1504 = vmatmul.mubr.msk.f32.vlgmr.msra.gmra.mrb[0].mxu0 %vm762_vm4, %v702_v34 }
 0x484   : > { %857 = vmatprep.mubr.f32.mxu0 %v2579_v16 }
 0x487   : > { %1505 = vmatmul.mubr.msk.f32.gmra.mrb[2].mxu0 %vm762_vm4, %v703_v2 }
 0x488   : > { %863 = vmatprep.mubr.f32.mxu0 %v2579_v16 }
 0x48b   : > { %1506 = vmatmul.mubr.msk.f32.gmra.mrb[4].mxu0 %vm762_vm4, %v704_v7 }
 0x48c   : > { %869 = vmatprep.mubr.f32.mxu0 %v2579_v16 }
 0x48f   : > { %1507 = vmatmul.mubr.msk.f32.gmra.mrb[6].mxu0 %vm762_vm4, %v705_v35 }
 0x490   : > { %875 = vmatprep.mubr.f32.mxu0 %v2579_v16 }
 0x493   : > { %1508 = vmatmul.mubr.msk.f32.gmra.mrb[8].mxu0 %vm762_vm4, %v706_v36 }
 0x494   : > { %881 = vmatprep.mubr.f32.mxu0 %v2579_v16 }
 0x497   : > { %1509 = vmatmul.mubr.msk.f32.gmra.mrb[10].mxu0 %vm762_vm4, %v707_v37 }
 0x498   : > { %887 = vmatprep.mubr.f32.mxu0 %v2579_v16 }
 0x49b   : > { %1510 = vmatmul.mubr.msk.f32.gmra.mrb[12].mxu0 %vm762_vm4, %v708_v52 }
 0x49c   : > { %893 = vmatprep.mubr.f32.mxu0 %v2579_v16 }
 0x49f   : > { %1511 = vmatmul.mubr.msk.f32.gmra.mrb[14].mxu0 %vm762_vm4, %v709_v54 }
 0x556   : > { %v853_v39 = vpop.f32.mrb[0].mxu0 }
 0x557   : > { %v854_v40 = vadd.f32 %v853_v39, %v725_v38  ;;  %v855_v41 = vpop.f32.mrb[1].mxu0 }
 0x558   : > { %v856_v42 = vadd.f32 %v855_v41, %v725_v38  ;;  %v745_v38 = vpop.permute.xlu0 %744 }
 0x559   : > { %v916_v43 = vmul.f32 0.70710677, %v854_v40  ;;  %v2120_v27 = vmul.f32 0.5, %v854_v40 }
 0x55a   : > { %v2098_v45 = vmul.f32 0.70710677, %v856_v42  ;;  %v859_v46 = vpop.f32.mrb[2].mxu0  ;;  %v2126_v59 = vmul.f32 0.5, %v856_v42 }
 0x55b   : > { %v964_v48 = vand.u32 2147483647, %v916_v43  ;;  %v2100_v50 = vadd.f32 %v859_v46, %v730_v44  ;;  %v861_v51 = vpop.f32.mrb[3].mxu0  ;;  %vm932_vm5 = vcmp.ge.f32.partialorder %v916_v43, 0.0  ;;  %2598 = vst [vmem:[#allocation11_spill] sm:$0xff] %v2120_v27 }
 0x55c   : > { %v965_v55 = vand.u32 2147483647, %v2098_v45  ;;  %v862_v57 = vadd.f32 %v861_v51, %v730_v44  ;;  %v2124_v31 = vsel %vm932_vm5, 1.0, %v2580_v30  ;;  %2600 = vst [vmem:[#allocation13_spill] sm:$0xff] %v2126_v59  ;;  %v2272_v47 = vpop.permute.xlu0 %754  ;;  %vm933_vm14 = vcmp.ge.f32.partialorder %v2098_v45, 0.0 }
 0x55d   : > { %2597 = vst [vmem:[#allocation10_spill] sm:$0xff] %v2100_v50  ;;  %v1172_v53 = vsub.f32 0.0, %v964_v48  ;;  %v2104_v56 = vmul.f32 0.70710677, %v2100_v50  ;;  %v980_v60 = vmul.f32 0.3275911, %v964_v48 }
 0x55e   : > { %v865_v58 = vpop.f32.mrb[4].mxu0  ;;  %v981_v5 = vmul.f32 0.3275911, %v965_v55  ;;  %v1173_v8 = vsub.f32 0.0, %v965_v55  ;;  %v2107_v11 = vmul.f32 0.70710677, %v862_v57 }
 0x55f   : > { %v867_v62 = vpop.f32.mrb[5].mxu0  ;;  %v1188_v3 = vmul.f32 %v1172_v53, %v964_v48  ;;  %v966_v6 = vand.u32 2147483647, %v2104_v56  ;;  %v866_v9 = vadd.f32 %v865_v58, %v735_v63  ;;  %v996_v14 = vadd.f32 1.0, %v980_v60  ;;  %2599 = vst [vmem:[#allocation12_spill] sm:$0xff] %v2124_v31 }
 0x560   : > { %v2109_v12 = vadd.f32 %v867_v62, %v735_v63  ;;  %v997_v61 = vadd.f32 1.0, %v981_v5  ;;  %v1189_v19 = vmul.f32 %v1173_v8, %v965_v55  ;;  %v967_v24 = vand.u32 2147483647, %v2107_v11  ;;  %v750_v8 = vpop.permute.xlu1 %749 }
 0x561   : > { %v1204_v17 = vmul.f32 1.442695, %v1188_v3  ;;  %v1174_v18 = vsub.f32 0.0, %v966_v6  ;;  %v2111_v4 = vmul.f32 0.70710677, %v866_v9  ;;  %1606 = vrcp.f32 %v996_v14 }
 0x562   : > { %v871_v10 = vpop.f32.mrb[6].mxu0  ;;  %v982_v20 = vmul.f32 0.3275911, %v966_v6  ;;  %v2114_v21 = vmul.f32 0.70710677, %v2109_v12  ;;  %1608 = vrcp.f32 %v997_v61  ;;  %v1175_v39 = vsub.f32 0.0, %v967_v24 }
 0x563   : > { %v873_v13 = vpop.f32.mrb[7].mxu0  ;;  %v2116_v22 = vadd.f32 %v871_v10, %v740_v15  ;;  %v968_v25 = vand.u32 2147483647, %v2111_v4  ;;  %v1190_v33 = vmul.f32 %v1174_v18, %v966_v6  ;;  %v1206_v34 = vmul.f32 1.442695, %v1189_v19 }
 0x564   : > { %v2128_v32 = vadd.f32 %v873_v13, %v740_v15  ;;  %v969_v49 = vand.u32 2147483647, %v2114_v21  ;;  %v998_v2 = vadd.f32 1.0, %v982_v20  ;;  %1610 = vpow2.f32 %v1204_v17 }
 0x565   : > { %v984_v0 = vmul.f32 0.3275911, %v968_v25  ;;  %v2132_v7 = vmul.f32 0.70710677, %v2116_v22  ;;  %v983_v36 = vmul.f32 0.3275911, %v967_v24  ;;  %v1191_v3 = vmul.f32 %v1175_v39, %v967_v24 }
 0x566   : > { %v877_v23 = vpop.f32.mrb[8].mxu0  ;;  %v985_v52 = vmul.f32 0.3275911, %v969_v49  ;;  %v1176_v40 = vsub.f32 0.0, %v968_v25  ;;  %v2138_v42 = vmul.f32 0.70710677, %v2128_v32 }
 0x567   : > { %v879_v26 = vpop.f32.mrb[9].mxu0  ;;  %v1000_v37 = vadd.f32 1.0, %v984_v0  ;;  %v970_v41 = vand.u32 2147483647, %v2132_v7  ;;  %v1208_v43 = vmul.f32 1.442695, %v1190_v33  ;;  %v2140_v46 = vadd.f32 %v877_v23, %v745_v38 }
 0x568   : > { %v1001_v44 = vadd.f32 1.0, %v985_v52  ;;  %v2142_v48 = vmul.f32 0.5, %v862_v57  ;;  %v2144_v51 = vmul.f32 0.5, %v866_v9  ;;  %v999_v58 = vadd.f32 1.0, %v983_v36 }
 0x569   : > { %1612 = vrcp.f32 %v1000_v37  ;;  %v986_v53 = vmul.f32 0.3275911, %v970_v41  ;;  %v1177_v60 = vsub.f32 0.0, %v969_v49  ;;  %v2149_v62 = vand.u32 2147483647, %v2138_v42 }
 0x56a   : > { %v883_v35 = vpop.f32.mrb[10].mxu0  ;;  %1614 = vpow2.f32 %v1206_v34  ;;  %2601 = vst [vmem:[#allocation14_spill] sm:$0xff] %v2142_v48  ;;  %v1192_v5 = vmul.f32 %v1176_v40, %v968_v25  ;;  %vm936_vm6 = vcmp.ge.f32.partialorder %v2111_v4, 0.0  ;;  %v2156_v9 = vmul.f32 0.70710677, %v2140_v46 }
 0x56b   : > { %v2134_v54 = vpop.f32.mrb[11].mxu0  ;;  %1616 = vrcp.f32 %v998_v2  ;;  %v1002_v6 = vadd.f32 1.0, %v986_v53  ;;  %v987_v57 = vmul.f32 0.3275911, %v2149_v62  ;;  %v1178_v10 = vsub.f32 0.0, %v970_v41  ;;  %v2164_v17 = vpop.eup %1606 }
 0x56c   : > { %1618 = vrcp.f32 %v1001_v44  ;;  %v2158_v13 = vadd.f32 %v879_v26, %v745_v38  ;;  %v2160_v14 = vadd.f32 %v883_v35, %v750_v8  ;;  %vm937_vm7 = vcmp.ge.f32.partialorder %v2114_v21, 0.0  ;;  %v2172_v23 = vpop.eup %1608 }
 0x56d   : > { %1620 = vpow2.f32 %v1208_v43  ;;  %v1193_v61 = vmul.f32 %v1177_v60, %v969_v49  ;;  %v1003_v18 = vadd.f32 1.0, %v987_v57  ;;  %v2168_v19 = vand.u32 2147483647, %v2156_v9 }
 0x56e   : > { %v2146_v55 = vpop.f32.mrb[12].mxu0  ;;  %1622 = vrcp.f32 %v1002_v6  ;;  %v1212_v24 = vmul.f32 1.442695, %v1192_v5  ;;  %v2175_v25 = vmul.f32 0.5, %v2109_v12  ;;  %v2178_v26 = vmul.f32 0.70710677, %v2158_v13  ;;  %v2180_v33 = vpop.eup %1610 }
 0x56f   : > { %v2151_v63 = vpop.f32.mrb[13].mxu0  ;;  %1624 = vrcp.f32 %v999_v58  ;;  %v2182_v21 = vmul.f32 1.442695, %v1191_v3  ;;  %v2187_v0 = vsel %vm936_vm6, 1.0, %v2580_v30  ;;  %v988_v49 = vmul.f32 0.3275911, %v2168_v19 }
 0x570   : > { %1626 = vrcp.f32 %v1003_v18  ;;  %v2191_v34 = vsel %vm937_vm7, 1.0, %v2580_v30  ;;  %v1194_v12 = vmul.f32 %v1178_v10, %v970_v41  ;;  %v2194_v2 = vand.u32 2147483647, %v2178_v26 }
 0x571   : > { %v2197_v35 = vmul.f32 0.70710677, %v2160_v14  ;;  %v1214_v37 = vmul.f32 1.442695, %v1193_v61  ;;  %v2202_v4 = vmul.f32 0.5, %v2116_v22  ;;  %vm938_vm8 = vcmp.ge.f32.partialorder %v2132_v7, 0.0 }
 0x572   : > { %v2162_v15 = vpop.f32.mrb[14].mxu0  ;;  %v1004_v52 = vadd.f32 1.0, %v988_v49  ;;  %1628 = vpow2.f32 %v1212_v24  ;;  %v1179_v40 = vsub.f32 0.0, %v2149_v62  ;;  %v989_v41 = vmul.f32 0.3275911, %v2194_v2 }
 0x573   : > { %v2170_v20 = vpop.f32.mrb[15].mxu0  ;;  %v2199_v36 = vpop.eup %1612  ;;  %v2213_v44 = vmul.f32 0.5, %v2128_v32  ;;  %vm939_vm9 = vcmp.ge.f32.partialorder %v2138_v42, 0.0  ;;  %v2217_v22 = vand.u32 2147483647, %v2197_v35  ;;  %v2222_v5 = vadd.f32 %v2134_v54, %v750_v8 }
 0x574   : > { %v2205_v38 = vpop.eup %1614  ;;  %v1032_v39 = vmul.f32 1.0614054, %v2199_v36  ;;  %1630 = vrcp.f32 %v1004_v52  ;;  %v1216_v60 = vmul.f32 1.442695, %v1194_v12  ;;  %v1005_v3 = vadd.f32 1.0, %v989_v41 }
 0x575   : > { %v2210_v43 = vpop.eup %1616  ;;  %1632 = vpow2.f32 %v1214_v37  ;;  %v2230_v32 = vsel %vm938_vm8, 1.0, %v2580_v30  ;;  %v990_v42 = vmul.f32 0.3275911, %v2217_v22  ;;  %v2237_v18 = vsel %vm939_vm9, 1.0, %v2580_v30 }
 0x576   : > { %v2219_v53 = vpop.eup %1618  ;;  %v1048_v58 = vadd.f32 -1.4531521, %v1032_v39  ;;  %v1195_v54 = vmul.f32 %v1179_v40, %v2149_v62  ;;  %1634 = vrcp.f32 %v1005_v3  ;;  %vm940_vm10 = vcmp.ge.f32.partialorder %v2156_v9, 0.0 }
 0x577   : > { %v2224_v6 = vpop.eup %1620  ;;  %v1033_v57 = vmul.f32 1.0614054, %v2219_v53  ;;  %v1006_v7 = vadd.f32 1.0, %v990_v42  ;;  %1636 = vpow2.f32 %v1216_v60  ;;  %v1180_v37 = vsub.f32 0.0, %v2168_v19 }
 0x578   : > { %v2233_v10 = vpop.eup %1622  ;;  %v1064_v61 = vmul.f32 %v2199_v36, %v1048_v58  ;;  %v2246_v52 = vmul.f32 0.70710677, %v2222_v5  ;;  %v2252_v41 = vmul.f32 0.5, %v2140_v46  ;;  %v2257_v60 = vsel %vm940_vm10, 1.0, %v2580_v30 }
 0x579   : > { %v1049_v8 = vadd.f32 -1.4531521, %v1033_v57  ;;  %v1034_v24 = vmul.f32 1.0614054, %v2233_v10  ;;  %v2242_v49 = vpop.eup %1624  ;;  %1638 = vrcp.f32 %v1006_v7  ;;  %vm941_vm11 = vcmp.ge.f32.partialorder %v2178_v26, 0.0  ;;  %v760_v26 = vpop.permute.xlu1 %759 }
 0x57a   : > { %v1080_v12 = vadd.f32 1.4214138, %v1064_v61  ;;  %v2248_v39 = vpop.eup %1626  ;;  %v2260_v3 = vand.u32 2147483647, %v2246_v52  ;;  %v1218_v61 = vmul.f32 1.442695, %v1195_v54 }
 0x57b   : > { %v1065_v62 = vmul.f32 %v2219_v53, %v1049_v8  ;;  %v1050_v40 = vadd.f32 -1.4531521, %v1034_v24  ;;  %v1035_v58 = vmul.f32 1.0614054, %v2248_v39  ;;  %v2264_v8 = vmul.f32 0.5, %v2158_v13 }
 0x57c   : > { %v1096_v9 = vmul.f32 %v2199_v36, %v1080_v12  ;;  %v2266_v46 = vpop.eup %1628  ;;  %v1196_v12 = vmul.f32 %v1180_v37, %v2168_v19  ;;  %v991_v16 = vmul.f32 0.3275911, %v2260_v3  ;;  %v1181_v54 = vsub.f32 0.0, %v2194_v2 }
 0x57d   : > { %v1081_v57 = vadd.f32 1.4214138, %v1065_v62  ;;  %v1066_v42 = vmul.f32 %v2233_v10, %v1050_v40  ;;  %v1051_v7 = vadd.f32 -1.4531521, %v1035_v58  ;;  %v1182_v13 = vsub.f32 0.0, %v2217_v22 }
 0x57e   : > { %v1112_v24 = vadd.f32 -0.28449672, %v1096_v9  ;;  %v2270_v30 = vpop.eup %1630  ;;  %v1007_v58 = vadd.f32 1.0, %v991_v16  ;;  %v2281_v19 = vadd.f32 %v2146_v55, %v2272_v47  ;;  %1640 = vpow2.f32 %v1218_v61 }
 0x57f   : > { %v1097_v62 = vmul.f32 %v2219_v53, %v1081_v57  ;;  %v1082_v1 = vadd.f32 1.4214138, %v1066_v42  ;;  %v1067_v40 = vmul.f32 %v2248_v39, %v1051_v7  ;;  %v1036_v9 = vmul.f32 1.0614054, %v2270_v30  ;;  %v1633_v37 = vpop.eup %1632 }
 0x580   : > { %2602 = vst [vmem:[#allocation15_spill] sm:$0xff] %v2281_v19  ;;  %v1128_v29 = vmul.f32 %v2199_v36, %v1112_v24  ;;  %v2285_v42 = vpop.eup %1634  ;;  %v1220_v31 = vmul.f32 1.442695, %v1196_v12  ;;  %1642 = vrcp.f32 %v1007_v58  ;;  %v1197_v55 = vmul.f32 %v1181_v54, %v2194_v2 }
 0x581   : > { %v1113_v28 = vadd.f32 -0.28449672, %v1097_v62  ;;  %v1098_v57 = vmul.f32 %v2233_v10, %v1082_v1  ;;  %v1083_v27 = vadd.f32 1.4214138, %v1067_v40  ;;  %v1052_v50 = vadd.f32 -1.4531521, %v1036_v9  ;;  %v1637_v59 = vpop.eup %1636 }
 0x582   : > { %v1037_v48 = vmul.f32 1.0614054, %v2285_v42  ;;  %v1198_v1 = vmul.f32 %v1182_v13, %v2217_v22  ;;  %v2294_v61 = vmul.f32 0.70710677, %v2281_v19  ;;  %v1144_v12 = vadd.f32 0.2548296, %v1128_v29 }
 0x583   : > { %v1129_v7 = vmul.f32 %v2219_v53, %v1113_v28  ;;  %v1114_v16 = vadd.f32 -0.28449672, %v1098_v57  ;;  %v1099_v24 = vmul.f32 %v2248_v39, %v1083_v27  ;;  %v1068_v62 = vmul.f32 %v2270_v30, %v1052_v50  ;;  %v2296_v40 = vpop.eup %1638 }
 0x584   : > { %v1053_v58 = vadd.f32 -1.4531521, %v1037_v48  ;;  %1644 = vpow2.f32 %v2182_v21  ;;  %v1038_v27 = vmul.f32 1.0614054, %v2296_v40  ;;  %v1222_v22 = vmul.f32 1.442695, %v1197_v55 }
 0x585   : > { %v1145_v9 = vadd.f32 0.2548296, %v1129_v7  ;;  %v1130_v28 = vmul.f32 %v2233_v10, %v1114_v16  ;;  %v1115_v2 = vadd.f32 -0.28449672, %v1099_v24  ;;  %v1084_v54 = vadd.f32 1.4214138, %v1068_v62 }
 0x586   : > { %v1069_v50 = vmul.f32 %v2285_v42, %v1053_v58  ;;  %v1183_v13 = vsub.f32 0.0, %v2260_v3  ;;  %1646 = vpow2.f32 %v1220_v31  ;;  %v1054_v48 = vadd.f32 -1.4531521, %v1038_v27 }
 0x587   : > { %v1146_v57 = vadd.f32 0.2548296, %v1130_v28  ;;  %v1131_v19 = vmul.f32 %v2248_v39, %v1115_v2  ;;  %v1100_v29 = vmul.f32 %v2270_v30, %v1084_v54  ;;  %v1160_v21 = vmul.f32 %v2199_v36, %v1144_v12 }
 0x588   : > { %v1085_v7 = vadd.f32 1.4214138, %v1069_v50  ;;  %v1224_v16 = vmul.f32 1.442695, %v1198_v1  ;;  %v2308_v24 = vand.u32 2147483647, %v2294_v61  ;;  %v1161_v62 = vmul.f32 %v2219_v53, %v1145_v9  ;;  %v1641_v2 = vpop.eup %1640 }
 0x589   : > { %v1147_v55 = vadd.f32 0.2548296, %v1131_v19  ;;  %v1116_v28 = vadd.f32 -0.28449672, %v1100_v29  ;;  %v1070_v58 = vmul.f32 %v2296_v40, %v1054_v48  ;;  %v1162_v54 = vmul.f32 %v2233_v10, %v1146_v57 }
 0x58a   : > { %v1101_v31 = vmul.f32 %v2285_v42, %v1085_v7  ;;  %1648 = vpow2.f32 %v1222_v22  ;;  %v1199_v27 = vmul.f32 %v1183_v13, %v2260_v3  ;;  %v2315_v36 = vpop.eup %1642  ;;  %v992_v53 = vmul.f32 0.3275911, %v2308_v24 }
 0x58b   : > { %v1163_v1 = vmul.f32 %v2248_v39, %v1147_v55  ;;  %v1132_v12 = vmul.f32 %v2270_v30, %v1116_v28  ;;  %v1086_v50 = vadd.f32 1.4214138, %v1070_v58  ;;  %v1240_v19 = vmul.f32 %v2266_v46, %v1160_v21 }
 0x58c   : > { %v1117_v9 = vadd.f32 -0.28449672, %v1101_v31  ;;  %1650 = vpow2.f32 %v1224_v16  ;;  %v1039_v10 = vmul.f32 1.0614054, %v2315_v36  ;;  %v1241_v57 = vmul.f32 %v1633_v37, %v1161_v62 }
 0x58d   : > { %v1243_v29 = vmul.f32 %v1641_v2, %v1163_v1  ;;  %v1148_v22 = vadd.f32 0.2548296, %v1132_v12  ;;  %v1102_v3 = vmul.f32 %v2296_v40, %v1086_v50  ;;  %v1242_v13 = vmul.f32 %v1637_v59, %v1162_v54 }
 0x58e   : > { %v1133_v48 = vmul.f32 %v2285_v42, %v1117_v9  ;;  %v2325_v39 = vmul.f32 0.5, %v2160_v14  ;;  %v1055_v7 = vadd.f32 -1.4531521, %v1039_v10  ;;  %v2327_v55 = vpop.eup %1644  ;;  %v1226_v16 = vmul.f32 1.442695, %v1199_v27 }
 0x58f   : > { %v1164_v46 = vmul.f32 %v2270_v30, %v1148_v22  ;;  %v1118_v21 = vadd.f32 -0.28449672, %v1102_v3  ;;  %v1008_v28 = vadd.f32 1.0, %v992_v53  ;;  %v1256_v58 = vsub.f32 1.0, %v1240_v19 }
 0x590   : > { %v1149_v37 = vadd.f32 0.2548296, %v1133_v48  ;;  %v1071_v62 = vmul.f32 %v2315_v36, %v1055_v7  ;;  %v2333_v59 = vadd.f32 %v2151_v63, %v2272_v47  ;;  %v1647_v2 = vpop.eup %1646  ;;  %v1257_v54 = vsub.f32 1.0, %v1241_v57 }
 0x591   : > { %v1259_v14 = vsub.f32 1.0, %v1243_v29  ;;  %v1134_v31 = vmul.f32 %v2296_v40, %v1118_v21  ;;  %1652 = vrcp.f32 %v1008_v28  ;;  %v1258_v1 = vsub.f32 1.0, %v1242_v13 }
 0x592   : > { %v2603_v12 = vmov -1.0   ;;  %vm942_vm12 = vcmp.ge.f32.partialorder %v2197_v35, 0.0  ;;  %v1087_v27 = vadd.f32 1.4214138, %v1071_v62  ;;  %v1244_v50 = vmul.f32 %v1647_v2, %v1164_v46 }
 0x593   : > { %v957_v30 = vsel %vm941_vm11, 1.0, %v2603_v12  ;;  %v1165_v53 = vmul.f32 %v2285_v42, %v1149_v37  ;;  %v1150_v19 = vadd.f32 0.2548296, %v1134_v31  ;;  %1654 = vpow2.f32 %v1226_v16 }
 0x594   : > { %v1649_v47 = vpop.eup %1648  ;;  %v1272_v63 = vmul.f32 %v1256_v58, %v2187_v0  ;;  %vm943_vm13 = vcmp.ge.f32.partialorder %v2246_v52, 0.0  ;;  %v1103_v9 = vmul.f32 %v2315_v36, %v1087_v27  ;;  %v2345_v10 = vmul.f32 0.70710677, %v2333_v59 }
 0x595   : > { %v1273_v57 = vmul.f32 %v1257_v54, %v2191_v34  ;;  %v1275_v29 = vmul.f32 %v1259_v14, %v2237_v18  ;;  %v1166_v22 = vmul.f32 %v2296_v40, %v1150_v19  ;;  %v1184_v42 = vsub.f32 0.0, %v2308_v24 }
 0x596   : > { %v1651_v3 = vpop.eup %1650  ;;  %v1274_v13 = vmul.f32 %v1258_v1, %v2230_v32  ;;  %v958_v0 = vsel %vm942_vm12, 1.0, %v2603_v12  ;;  %v1119_v48 = vadd.f32 -0.28449672, %v1103_v9  ;;  %v2356_v7 = vadd.f32 %v2162_v15, %v760_v26 }
 0x597   : > { %v1260_v46 = vsub.f32 1.0, %v1244_v50  ;;  %v1245_v21 = vmul.f32 %v1649_v47, %v1165_v53  ;;  %v1246_v34 = vmul.f32 %v1651_v3, %v1166_v22  ;;  %v977_v18 = vand.u32 2147483647, %v2345_v10 }
 0x598   : > { %v1288_v16 = vadd.f32 1.0, %v1272_v63  ;;  %v911_v40 = vmul.f32 0.5, %v2222_v5  ;;  %v959_v32 = vsel %vm943_vm13, 1.0, %v2603_v12  ;;  %v1135_v28 = vmul.f32 %v2315_v36, %v1119_v48 }
 0x599   : > { %v1289_v35 = vadd.f32 1.0, %v1273_v57  ;;  %v1291_v58 = vadd.f32 1.0, %v1275_v29  ;;  %v1200_v37 = vmul.f32 %v1184_v42, %v2308_v24  ;;  %v993_v15 = vmul.f32 0.3275911, %v977_v18 }
 0x59a   : > { %v1290_v62 = vadd.f32 1.0, %v1274_v13  ;;  %v1262_v2 = vsub.f32 1.0, %v1246_v34  ;;  %v1151_v54 = vadd.f32 0.2548296, %v1135_v28  ;;  %v2366_v14 = vmul.f32 0.70710677, %v2356_v7 }
 0x59b   : > { %v2368_v31 = vpop.eup %1652  ;;  %v1276_v5 = vmul.f32 %v1260_v46, %v2257_v60  ;;  %v1261_v1 = vsub.f32 1.0, %v1245_v21  ;;  %v1009_v52 = vadd.f32 1.0, %v993_v15  ;;  %v2372_v27 = vadd.f32 %v2170_v20, %v760_v26 }
 0x59c   : > { %v2375_v50 = vmul.f32 %v1288_v16, %v2144_v51  ;;  %v1167_v24 = vmul.f32 %v2315_v36, %v1151_v54  ;;  %v1040_v53 = vmul.f32 1.0614054, %v2368_v31  ;;  %v1185_v19 = vsub.f32 0.0, %v977_v18 }
 0x59d   : > { %v1655_v47 = vpop.eup %1654  ;;  %v2380_v63 = vmul.f32 %v1289_v35, %v2175_v25  ;;  %v2383_v9 = vmul.f32 %v1291_v58, %v2213_v44  ;;  %v1228_v60 = vmul.f32 1.442695, %v1200_v37  ;;  %1656 = vrcp.f32 %v1009_v52 }
 0x59e   : > { %v1278_v57 = vmul.f32 %v1262_v2, %v958_v0  ;;  %v1247_v20 = vmul.f32 %v1655_v47, %v1167_v24  ;;  %v1056_v26 = vadd.f32 -1.4531521, %v1040_v53  ;;  %v978_v51 = vand.u32 2147483647, %v2366_v14 }
 0x59f   : > { %v2387_v29 = vmul.f32 %v1290_v62, %v2202_v4  ;;  %v1292_v36 = vadd.f32 1.0, %v1276_v5  ;;  %v1277_v22 = vmul.f32 %v1261_v1, %v957_v30  ;;  %v2390_v42 = vmul.f32 0.70710677, %v2372_v27 }
 0x5a0   : > { %v1263_v25 = vsub.f32 1.0, %v1247_v20  ;;  %v1072_v3 = vmul.f32 %v2368_v31, %v1056_v26  ;;  %v1201_v44 = vmul.f32 %v1185_v19, %v977_v18  ;;  %v994_v13 = vmul.f32 0.3275911, %v978_v51 }
 0x5a1   : > { %1658 = vpow2.f32 %v1228_v60  ;;  %v979_v0 = vand.u32 2147483647, %v2390_v42  ;;  %v1029_v48 = vmul.f32 1.0614054, %v2172_v23  ;;  %v1529_v46 = vpack.c.bf16 %v2383_v9, %v2380_v63  ;;  %v719_v9 = vld [vmem:[%s2575_s9 + $0x8] sm:$0xff] }
 0x5a2   : > { %vm935_vm15 = vcmp.ge.f32.partialorder %v2107_v11, 0.0  ;;  %v1294_v4 = vadd.f32 1.0, %v1278_v57  ;;  %v1279_v30 = vmul.f32 %v1263_v25, %v959_v32  ;;  %v1088_v21 = vadd.f32 1.4214138, %v1072_v3 }
 0x5a3   : > { %v1010_v34 = vadd.f32 1.0, %v994_v13  ;;  %v2400_v16 = vmul.f32 %v1292_v36, %v2252_v41  ;;  %v1293_v18 = vadd.f32 1.0, %v1277_v22  ;;  %v995_v28 = vmul.f32 0.3275911, %v979_v0 }
 0x5a4   : > { %v1031_v35 = vmul.f32 1.0614054, %v2242_v49  ;;  %v1295_v58 = vadd.f32 1.0, %v1279_v30  ;;  %v1104_v37 = vmul.f32 %v2368_v31, %v1088_v21  ;;  %v1230_v15 = vmul.f32 1.442695, %v1201_v44 }
 0x5a5   : > { %1660 = vrcp.f32 %v1010_v34  ;;  %v1186_v62 = vsub.f32 0.0, %v978_v51  ;;  %v1011_v2 = vadd.f32 1.0, %v995_v28  ;;  %v1045_v54 = vadd.f32 -1.4531521, %v1029_v48 }
 0x5a6   : > { %v1047_v5 = vadd.f32 -1.4531521, %v1031_v35  ;;  %v2405_v32 = vmul.f32 %v1294_v4, %v2325_v39  ;;  %v2407_v1 = vmul.f32 %v1295_v58, %v911_v40  ;;  %v1187_v41 = vsub.f32 0.0, %v979_v0 }
 0x5a7   : > { %v1028_v52 = vmul.f32 1.0614054, %v2164_v17  ;;  %v2410_v24 = vpop.eup %1656  ;;  %v1120_v53 = vadd.f32 -0.28449672, %v1104_v37  ;;  %1662 = vrcp.f32 %v1011_v2  ;;  %v1061_v19 = vmul.f32 %v2172_v23, %v1045_v54 }
 0x5a8   : > { %v1063_v47 = vmul.f32 %v2242_v49, %v1047_v5  ;;  %v2415_v60 = vmul.f32 %v1293_v18, %v2264_v8  ;;  %v1041_v57 = vmul.f32 1.0614054, %v2410_v24  ;;  %v1030_v39 = vmul.f32 1.0614054, %v2210_v43 }
 0x5a9   : > { %v1044_v40 = vadd.f32 -1.4531521, %v1028_v52  ;;  %v1202_v20 = vmul.f32 %v1186_v62, %v978_v51  ;;  %v1077_v26 = vadd.f32 1.4214138, %v1061_v19  ;;  %v1531_v22 = vpack.c.bf16 %v2387_v29, %v2375_v50  ;;  %v1319_v29 = vpop.permute.xlu0 %1318 }
 0x5aa   : > { %v1079_v36 = vadd.f32 1.4214138, %v1063_v47  ;;  %v1057_v25 = vadd.f32 -1.4531521, %v1041_v57  ;;  %v1203_v3 = vmul.f32 %v1187_v41, %v979_v0  ;;  %v1046_v44 = vadd.f32 -1.4531521, %v1030_v39 }
 0x5ab   : > { %v1060_v13 = vmul.f32 %v2164_v17, %v1044_v40  ;;  %v1659_v48 = vpop.eup %1658  ;;  %v1093_v8 = vmul.f32 %v2172_v23, %v1077_v26  ;;  %v1533_v30 = vpack.c.bf16 %v2407_v1, %v2415_v60  ;;  %v1535_v51 = vpack.c.bf16 %v2405_v32, %v2400_v16  ;;  %v2611_v60 = vld [vmem:[#allocation6_spill] sm:$0xff] }
 0x5ac   : > { %v1095_v4 = vmul.f32 %v2242_v49, %v1079_v36  ;;  %v1136_v21 = vmul.f32 %v2368_v31, %v1120_v53  ;;  %v1073_v34 = vmul.f32 %v2410_v24, %v1057_v25  ;;  %v1062_v0 = vmul.f32 %v2210_v43, %v1046_v44 }
 0x5ad   : > { %v1076_v18 = vadd.f32 1.4214138, %v1060_v13  ;;  %v949_v28 = vsel %vm933_vm14, 1.0, %v2603_v12  ;;  %v951_v35 = vsel %vm935_vm15, 1.0, %v2603_v12  ;;  %v1109_v58 = vadd.f32 -0.28449672, %v1093_v8 }
 0x5ae   : > { %v1111_v37 = vadd.f32 -0.28449672, %v1095_v4  ;;  %v1089_v2 = vadd.f32 1.4214138, %v1073_v34  ;;  %v1232_v54 = vmul.f32 1.442695, %v1202_v20  ;;  %1664 = vpow2.f32 %v1230_v15 }
 0x5af   : > { %v2437_v62 = vpop.eup %1660  ;;  %v1078_v5 = vadd.f32 1.4214138, %v1062_v0  ;;  %v1092_v41 = vmul.f32 %v2164_v17, %v1076_v18  ;;  %vm934_vm0 = vcmp.ge.f32.partialorder %v2104_v56, 0.0  ;;  %v1234_v53 = vmul.f32 1.442695, %v1203_v3  ;;  %v2604_v56 = vld [vmem:[#allocation13_spill] sm:$0xff] }
 0x5b0   : > { %v1042_v52 = vmul.f32 1.0614054, %v2437_v62  ;;  %v1125_v45 = vmul.f32 %v2172_v23, %v1109_v58  ;;  %v1127_v19 = vmul.f32 %v2242_v49, %v1111_v37  ;;  %v1152_v11 = vadd.f32 0.2548296, %v1136_v21 }
 0x5b1   : > { %v1105_v47 = vmul.f32 %v2410_v24, %v1089_v2  ;;  %v1094_v57 = vmul.f32 %v2210_v43, %v1078_v5  ;;  %v1108_v39 = vadd.f32 -0.28449672, %v1092_v41  ;;  %v2446_v40 = vpop.eup %1662  ;;  %1666 = vpow2.f32 %v1232_v54 }
 0x5b2   : > { %v1058_v20 = vadd.f32 -1.4531521, %v1042_v52  ;;  %v1141_v26 = vadd.f32 0.2548296, %v1125_v45  ;;  %v1143_v36 = vadd.f32 0.2548296, %v1127_v19  ;;  %v1168_v34 = vmul.f32 %v2368_v31, %v1152_v11 }
 0x5b3   : > { %v1121_v25 = vadd.f32 -0.28449672, %v1105_v47  ;;  %v1043_v3 = vmul.f32 1.0614054, %v2446_v40  ;;  %v1110_v44 = vadd.f32 -0.28449672, %v1094_v57  ;;  %v1124_v21 = vmul.f32 %v2164_v17, %v1108_v39 }
 0x5b4   : > { %v1074_v13 = vmul.f32 %v2437_v62, %v1058_v20  ;;  %v1157_v8 = vmul.f32 %v2172_v23, %v1141_v26  ;;  %v1159_v4 = vmul.f32 %v2242_v49, %v1143_v36  ;;  %1668 = vpow2.f32 %v1234_v53 }
 0x5b5   : > { %v1137_v15 = vmul.f32 %v2410_v24, %v1121_v25  ;;  %v1059_v0 = vadd.f32 -1.4531521, %v1043_v3  ;;  %v1126_v18 = vmul.f32 %v2210_v43, %v1110_v44  ;;  %v1140_v54 = vadd.f32 0.2548296, %v1124_v21 }
 0x5b6   : > { %v1090_v58 = vadd.f32 1.4214138, %v1074_v13  ;;  %v1237_v37 = vmul.f32 %v2205_v38, %v1157_v8  ;;  %v1239_v2 = vmul.f32 %v2327_v55, %v1159_v4  ;;  %v1248_v19 = vmul.f32 %v1659_v48, %v1168_v34  ;;  %v2605_v4 = vld [vmem:[#allocation14_spill] sm:$0xff]  ;;  %v2606_v34 = vld [vmem:[#allocation12_spill] sm:$0xff] }
 0x5b7   : > { %v1153_v5 = vadd.f32 0.2548296, %v1137_v15  ;;  %v1075_v23 = vmul.f32 %v2446_v40, %v1059_v0  ;;  %v1142_v49 = vadd.f32 0.2548296, %v1126_v18  ;;  %v1156_v45 = vmul.f32 %v2164_v17, %v1140_v54  ;;  %v2607_v0 = vld [vmem:[#allocation10_spill] sm:$0xff] }
 0x5b8   : > { %v1106_v41 = vmul.f32 %v2437_v62, %v1090_v58  ;;  %v1253_v52 = vsub.f32 1.0, %v1237_v37  ;;  %v1255_v31 = vsub.f32 1.0, %v1239_v2  ;;  %v950_v53 = vsel %vm934_vm0, 1.0, %v2603_v12  ;;  %v1665_v48 = vpop.eup %1664 }
 0x5b9   : > { %v1169_v11 = vmul.f32 %v2410_v24, %v1153_v5  ;;  %v1091_v47 = vadd.f32 1.4214138, %v1075_v23  ;;  %v1158_v38 = vmul.f32 %v2210_v43, %v1142_v49  ;;  %v1236_v20 = vmul.f32 %v2180_v33, %v1156_v45 }
 0x5ba   : > { %v1122_v57 = vadd.f32 -0.28449672, %v1106_v41  ;;  %v1269_v55 = vmul.f32 %v1253_v52, %v949_v28  ;;  %v1271_v39 = vmul.f32 %v1255_v31, %v951_v35  ;;  %vm944_vm1 = vcmp.ge.f32.partialorder %v2294_v61, 0.0 }
 0x5bb   : > { %v1107_v26 = vmul.f32 %v2446_v40, %v1091_v47  ;;  %v1238_v17 = vmul.f32 %v2224_v6, %v1158_v38  ;;  %v1252_v25 = vsub.f32 1.0, %v1236_v20  ;;  %v1667_v28 = vpop.eup %1666  ;;  %v1264_v35 = vsub.f32 1.0, %v1248_v19  ;;  %v2608_v19 = vld [vmem:[#allocation11_spill] sm:$0xff] }
 0x5bc   : > { %v1138_v24 = vmul.f32 %v2437_v62, %v1122_v57  ;;  %v1285_v36 = vadd.f32 1.0, %v1269_v55  ;;  %v1287_v43 = vadd.f32 1.0, %v1271_v39  ;;  %v1249_v3 = vmul.f32 %v1665_v48, %v1169_v11 }
 0x5bd   : > { %v1123_v33 = vadd.f32 -0.28449672, %v1107_v26  ;;  %v1254_v44 = vsub.f32 1.0, %v1238_v17  ;;  %v1268_v15 = vmul.f32 %v1252_v25, %v2606_v34  ;;  %v902_v6 = vmul.f32 0.5, %v2607_v0  ;;  %v2609_v26 = vld [vmem:[#allocation15_spill] sm:$0xff]  ;;  %v2614_v34 = vld [vmem:[#allocation9_spill] sm:$0xff] }
 0x5be   : > { %v1154_v13 = vadd.f32 0.2548296, %v1138_v24  ;;  %v1301_v8 = vmul.f32 %v1285_v36, %v2604_v56  ;;  %v1303_v21 = vmul.f32 %v1287_v43, %v2605_v4  ;;  %v960_v18 = vsel %vm944_vm1, 1.0, %v2603_v12  ;;  %v1669_v23 = vpop.eup %1668  ;;  %v2613_v4 = vld [vmem:[#allocation8_spill] sm:$0xff] }
 0x5bf   : > { %v1139_v58 = vmul.f32 %v2446_v40, %v1123_v33  ;;  %v1270_v37 = vmul.f32 %v1254_v44, %v950_v53  ;;  %vm945_vm2 = vcmp.ge.f32.partialorder %v2345_v10, 0.0  ;;  %v1284_v5 = vadd.f32 1.0, %v1268_v15 }
 0x5c0   : > { %v1170_v2 = vmul.f32 %v2437_v62, %v1154_v13  ;;  %v1525_v54 = vpack.c.bf16 %v1303_v21, %v1301_v8  ;;  %v1265_v49 = vsub.f32 1.0, %v1249_v3  ;;  %vm946_vm3 = vcmp.ge.f32.partialorder %v2366_v14, 0.0 }
 0x5c1   : > { %v1155_v41 = vadd.f32 0.2548296, %v1139_v58  ;;  %v1286_v52 = vadd.f32 1.0, %v1270_v37  ;;  %v1280_v31 = vmul.f32 %v1264_v35, %v960_v18  ;;  %v1300_v11 = vmul.f32 %v1284_v5, %v2608_v19 }
 0x5c2   : > { %v1250_v45 = vmul.f32 %v1667_v28, %v1170_v2  ;;  %1526 = vmatprep.subr.bf16.mxu1 %v1525_v54  ;;  %v961_v10 = vsel %vm945_vm2, 1.0, %v2603_v12  ;;  %v962_v62 = vsel %vm946_vm3, 1.0, %v2603_v12  ;;  %vm947_vm4 = vcmp.ge.f32.partialorder %v2390_v42, 0.0 }
 0x5c3   : > { %v1171_v61 = vmul.f32 %v2446_v40, %v1155_v41  ;;  %v1302_v47 = vmul.f32 %v1286_v52, %v902_v6  ;;  %v1281_v57 = vmul.f32 %v1265_v49, %v961_v10  ;;  %v1296_v39 = vadd.f32 1.0, %v1280_v31 }
 0x5c4   : > { %v1266_v38 = vsub.f32 1.0, %v1250_v45  ;;  %v912_v17 = vmul.f32 0.5, %v2609_v26  ;;  %v914_v40 = vmul.f32 0.5, %v2356_v7  ;;  %v963_v24 = vsel %vm947_vm4, 1.0, %v2603_v12 }
 0x5c5   : > { %v1251_v55 = vmul.f32 %v1669_v23, %v1171_v61  ;;  %v1527_v14 = vpack.c.bf16 %v1302_v47, %v1300_v11  ;;  %v1297_v36 = vadd.f32 1.0, %v1281_v57  ;;  %v913_v28 = vmul.f32 0.5, %v2333_v59 }
 0x5c6   : > { %v1282_v20 = vmul.f32 %v1266_v38, %v962_v62  ;;  %v1312_v42 = vmul.f32 %v1296_v39, %v912_v17  ;;  %v915_v35 = vmul.f32 0.5, %v2372_v27  ;;  %v718_v27 = vld [vmem:[%s2575_s9] sm:$0xff]  ;;  %vm1326_vm5 = vcmask 523264  }
 0x5c7   : > { %v1267_v53 = vsub.f32 1.0, %v1251_v55  ;;  %1528 = vmatpush1.bf16.msra.mxu1 %v1527_v14  ;;  %v1313_v7 = vmul.f32 %v1297_v36, %v913_v28  ;;  %v2610_v50 = vmov 0.0  }
 0x5c8   : > { %v1298_v48 = vadd.f32 1.0, %v1282_v20  ;;  %1530 = vmatprep.subr.bf16.mxu1 %v1529_v46 }
 0x5c9   : > { %v1283_v43 = vmul.f32 %v1267_v53, %v963_v24 }
 0x5ca   : > { %v1314_v25 = vmul.f32 %v1298_v48, %v914_v40 }
 0x5cb   : > { %v1299_v3 = vadd.f32 1.0, %v1283_v43  ;;  %1532 = vmatpush1.bf16.msra.mxu1 %v1531_v22 }
 0x5cc   : > { %1534 = vmatprep.subr.bf16.mxu1 %v1533_v30  ;;  %v1539_v12 = vpack.c.bf16 %v1314_v25, %v1312_v42  ;;  %v1324_v30 = vpop.permute.xlu1 %1323 }
 0x5cd   : > { %v1315_v63 = vmul.f32 %v1299_v3, %v915_v35 }
 0x5cf   : > { %1536 = vmatpush1.bf16.msra.mxu1 %v1535_v51  ;;  %v1537_v59 = vpack.c.bf16 %v1315_v63, %v1313_v7  ;;  %v2612_v51 = vld [vmem:[#allocation7_spill] sm:$0xff] }
 0x5d1   : > { %1538 = vmatprep.subr.bf16.mxu1 %v1537_v59 }
 0x5d3   : > { %1540 = vmatpush1.bf16.msra.mxu1 %v1539_v12 }
 0x5d6   : > { %1512 = vmatmul.mubr.msk.f32.vlgmr.msra.gmra.mrb[0].mxu1 %vm1326_vm5, %v718_v27 }
 0x5d7   : > { %1403 = vmatprep.mubr.f32.mxu1 %v2610_v50 }
 0x5da   : > { %1513 = vmatmul.mubr.msk.f32.gmra.mrb[2].mxu1 %vm1326_vm5, %v719_v9 }
 0x6a9   : > { %v1399_v46 = vpop.f32.mrb[0].mxu1 }
 0x6aa   : > { %v1400_v16 = vadd.f32 %v1399_v46, %v1319_v29  ;;  %v1401_v32 = vpop.f32.mrb[1].mxu1 }
 0x6ab   : > { %v1402_v1 = vadd.f32 %v1401_v32, %v1319_v29 }
 0x6ac   : > { %v1410_v22 = vadd.f32 %v1400_v16, %v2611_v60 }
 0x6ad   : > { %v1411_v33 = vadd.f32 %v1402_v1, %v2612_v51  ;;  %v1405_v44 = vpop.f32.mrb[2].mxu1 }
 0x6ae   : > { %1414 = vst [vmem:[%s379_s0] sm:$0xff] %v1410_v22  ;;  %v1406_v13 = vadd.f32 %v1405_v44, %v1324_v30  ;;  %v1407_v56 = vpop.f32.mrb[3].mxu1 }
 0x6af   : > { %1415 = vst [vmem:[%s379_s0 + $0x8] sm:$0xff] %v1411_v33  ;;  %v1408_v8 = vadd.f32 %v1407_v56, %v1324_v30 }
 0x6b0   : > { %v1412_v21 = vadd.f32 %v1406_v13, %v2613_v4 }
 0x6b1   : > { %v1413_v15 = vadd.f32 %v1408_v8, %v2614_v34 }
 0x6b2   : > { %1416 = vst [vmem:[%s379_s0 + $0x10] sm:$0xff] %v1412_v21 }
 0x6b3   : > { %1417 = vst [vmem:[%s379_s0 + $0x18] sm:$0xff] %v1413_v15 }
 0x6b4   : > { %1683 = shalt.err (!%p1680_p3)
}
 0x6b5   : > { %s1684_s24 = scalar_lea.hbm %s2522_s14, 512  ;;  %s1688_s16 = scalar_lea.hbm %s2577_s11, 1024 }
 0x6b6   : > { %p1685_p4 = scmp.ne.s32.totalorder %s2522_s14, %s1684_s24  ;;  %p1689_p9 = scmp.lt.u32.totalorder %s2522_s14, %s2577_s11 }
 0x6b7   : > { %p1690_p10 = scmp.lt.u32.totalorder %s1688_s16, %s1684_s24  ;;  %p1692_p12 = scmp.lt.u32.totalorder %s1684_s24, %s2522_s14 }
 0x6b8   : > { %p1686_p7 = pnand %p1685_p4, %p1841_p5 }
 0x6b9   : > { %p1691_p11 = por %p1690_p10, %p1689_p9 }
 0x6ba   : > { %p1687_p8 = pneg %p1686_p7 }
 0x6bb   : > { %p1693_p13 = por %p1692_p12, %p1691_p11 }
 0x6bd   : > { %p1694_p0 = pnand %p1693_p13, %p1687_p8 }
 0x6bf   : > { %1697 = shalt.err (!%p1694_p0)
}
 0x6c0   : > { %s1742_s21 = smov 256   ;;  %s2615_s15 = smov 16  }
 0x6c1   : > { %1553 = dma.vmem_to_hbm [thread:$0]  (%p1841_p5), %s2515_s26, 512, %s2522_s14, %s2524_s13, %s1742_s21, %s1742_s21, %s2615_s15  }
 0x6c2 PF: > { %p1559_p1 = scmp.ge.s32.totalorder %s1732_s20, 2  ;;  %s1447_s29 = sand.u32 1, %s1720_s17  }
 0x6c3   : > { %s1448_s22 = scalar_lea.sflag [#allocation3], %s1447_s29 }
 0x6c4   : > { %p1556_p2 = pnand %p1559_p1, %p1845_p6 }
 0x6c6   : > { %1715 = dma.done.wait (!%p1556_p2), %s1448_s22, 512  }
 0x6c7   : > { %1717 = vsyncadd (!%p1556_p2), %s1448_s22, 4294966784  ;;  %s2616_s27 = sld [smem:[#allocation5_spill]]  ;;  %p21_p3 = scmp.ge.s32.totalorder %s1828_s23, 4  }
 0x6c8   : > { %s2617_s17 = smov %s1724_s18  ;;  %s2618_s18 = smov %s1728_s19 }
 0x6c9   : > { %s2620_s20 = smov %s1828_s23  ;;  %23 = sbr.rel (!%p21_p3) target bundleno = 5 (0x5), region = 102 }
 0x6cd   : > { %s2619_s19 = smov %s2616_s27 }
 0x6d0   :  { %1453 = vsyncpa [#allocation3], 1 }
 0x6d1   :  { %1455 = vsyncpa [#allocation3 + $0x1], 1 }

</bundles_post_ra>
